<compile_context>
chip_gen: v5e
topology: v5e:2x2
jax: 0.10.0
libtpu: 0.0.40
codegen_flags: <defaults>
</compile_context>

<pallas_src>
import functools

import jax
import jax.numpy as jnp
from jax import lax
from jax.experimental import pallas as pl
from jax.experimental.pallas import tpu as pltpu

_LANE = 128
_MIN_VMEM = 16 * 1024 * 1024
_MAX_VMEM = 64 * 1024 * 1024      # stay within v7x's 64 MiB per-TC VMEM


def _ceil_to(v, m):
    return ((v + m - 1) // m) * m


def _row_tile(n):
    """Largest row tile that divides n (full block for small / ragged graphs)."""
    for t in (512, 256, 128):
        if n % t == 0:
            return t
    return n


def _compiler_params(semantics, working_set_bytes):
    vmem = int(min(max(3 * working_set_bytes, _MIN_VMEM), _MAX_VMEM))
    return pltpu.CompilerParams(dimension_semantics=semantics,
                                vmem_limit_bytes=vmem)


def _pad2(a, rows, cols):
    r, c = a.shape
    if r == rows and c == cols:
        return a
    return jnp.pad(a, ((0, rows - r), (0, cols - c)))


# ------------------------------- kernels -------------------------------------

def _dense_kernel(h_ref, w_ref, b_ref, o_ref, *, act):
    """out = act(h @ W + b), one row tile per grid step, W/b resident."""
    y = jnp.dot(h_ref[...], w_ref[...], preferred_element_type=jnp.float32)
    y = y + b_ref[...].astype(jnp.float32)
    if act == "tanh":
        y = jnp.tanh(y)
    elif act == "relu":
        y = jnp.maximum(y, 0.0)
    o_ref[...] = y.astype(o_ref.dtype)


def _dense(h, w, b, act):
    n, k = h.shape
    d = w.shape[1]
    tm = _row_tile(n)
    ws = 2 * (tm * k + tm * d) * 2 + (k * d + d) * 2
    return pl.pallas_call(
        functools.partial(_dense_kernel, act=act),
        out_shape=jax.ShapeDtypeStruct((n, d), jnp.bfloat16),
        grid=(n // tm,),
        in_specs=[pl.BlockSpec((tm, k), lambda i: (i, 0)),
                  pl.BlockSpec((k, d), lambda i: (0, 0)),
                  pl.BlockSpec((1, d), lambda i: (0, 0))],
        out_specs=pl.BlockSpec((tm, d), lambda i: (i, 0)),
        compiler_params=_compiler_params(("parallel",), ws),
        cost_estimate=pl.CostEstimate(
            flops=2 * n * k * d,
            transcendentals=n * d if act == "tanh" else 0,
            bytes_accessed=2 * (n * k + k * d + n * d)),
    )(h, w, b)


def _spmm_kernel(adj_ref, h_ref, o_ref, acc_ref):
    """out = adj @ h : (parallel row tiles) x (arbitrary K reduction)."""
    @pl.when(pl.program_id(1) == 0)
    def _():
        acc_ref[...] = jnp.zeros_like(acc_ref)

    acc_ref[...] += jnp.dot(adj_ref[...], h_ref[...],
                            preferred_element_type=jnp.float32)

    @pl.when(pl.program_id(1) == pl.num_programs(1) - 1)
    def _():
        o_ref[...] = acc_ref[...].astype(o_ref.dtype)


def _spmm(adj, h, out_dtype=jnp.bfloat16):
    n = adj.shape[0]
    d = h.shape[1]
    tm = _row_tile(n)
    tk = _row_tile(n)
    ob = jnp.dtype(out_dtype).itemsize
    ws = 2 * (tm * tk * 2 + tk * d * 2 + tm * d * ob) + tm * d * 4
    return pl.pallas_call(
        _spmm_kernel,
        out_shape=jax.ShapeDtypeStruct((n, d), out_dtype),
        grid=(n // tm, n // tk),
        in_specs=[pl.BlockSpec((tm, tk), lambda i, k: (i, k)),
                  pl.BlockSpec((tk, d), lambda i, k: (k, 0))],
        out_specs=pl.BlockSpec((tm, d), lambda i, k: (i, 0)),
        scratch_shapes=[pltpu.VMEM((tm, d), jnp.float32)],
        compiler_params=_compiler_params(("parallel", "arbitrary"), ws),
        cost_estimate=pl.CostEstimate(
            flops=2 * n * n * d,
            transcendentals=0,
            bytes_accessed=2 * n * n + 2 * n * d + ob * n * d),
    )(adj, h)


def _gram_kernel(zq_ref, zk_ref, o_ref):
    """A_pred row tile = sigmoid(normalize(zq) @ normalize(zk)^T) w/o transpose."""
    f32 = jnp.float32
    zq = zq_ref[...].astype(f32)
    zk = zk_ref[...].astype(f32)
    # F.normalize(z, p=2, dim=1) == z / clamp_min(||z||, 1e-12), via rsqrt (EUP).
    inv_q = lax.rsqrt(jnp.maximum(jnp.sum(zq * zq, axis=1, keepdims=True), 1e-24))
    inv_k = lax.rsqrt(jnp.maximum(jnp.sum(zk * zk, axis=1, keepdims=True), 1e-24))
    zqn = (zq * inv_q).astype(jnp.bfloat16)
    zkn = (zk * inv_k).astype(jnp.bfloat16)
    g = lax.dot_general(zqn, zkn, dimension_numbers=(((1,), (1,)), ((), ())),
                        preferred_element_type=f32)
    o_ref[...] = jax.nn.sigmoid(g).astype(o_ref.dtype)


def _gram_sigmoid(z):
    n, dz = z.shape
    tm = _row_tile(n)
    ws = 2 * (tm * dz * 2 + tm * n * 4) + n * dz * 2
    return pl.pallas_call(
        _gram_kernel,
        out_shape=jax.ShapeDtypeStruct((n, n), jnp.float32),
        grid=(n // tm,),
        in_specs=[pl.BlockSpec((tm, dz), lambda i: (i, 0)),
                  pl.BlockSpec((n, dz), lambda i: (0, 0))],
        out_specs=pl.BlockSpec((tm, n), lambda i: (i, 0)),
        compiler_params=_compiler_params(("parallel",), ws),
        cost_estimate=pl.CostEstimate(
            flops=2 * n * n * dz,
            transcendentals=n * n,
            bytes_accessed=4 * n * dz + 4 * n * n),
    )(z, z)


# ------------------------------- forward -------------------------------------

def netg1_forward(x, m, adj, params):
    """Mirrors NetG1.forward(x, m, adj) -> (x_prim, A_pred)."""
    del m  # unused by the PyTorch forward as well
    n, f = x.shape
    bf16 = jnp.bfloat16
    fp = _ceil_to(f, _LANE)
    hidden = params["lat_w1"].shape[1]
    hp = _ceil_to(hidden, _LANE)
    dzp = _ceil_to(64, _LANE)          # 64-wide latent, lane-padded to 128

    pw = lambda name, r, c: _pad2(params[name].astype(bf16), r, c)
    pb = lambda name, c: _pad2(params[name].astype(bf16), 1, c)
    zeros = lambda d: jnp.zeros((1, d), bf16)

    xb = _pad2(x.astype(bf16), n, fp)
    adjb = adj.astype(bf16)

    # ---- IGAE encoder: adj @ tanh(h @ W) x2, last layer linear ----
    h = _spmm(adjb, _dense(xb, pw("enc_w1", fp, 128), zeros(128), "tanh"))
    h = _spmm(adjb, _dense(h, pw("enc_w2", 128, 256), zeros(256), "tanh"))
    e = _spmm(adjb, _dense(h, pw("enc_w3", 256, dzp), zeros(dzp), "linear"))

    # ---- LatentMappingLayer(64, hidden, 64): Linear -> ReLU -> Linear ----
    hmid = _dense(e, pw("lat_w1", dzp, hp), pb("lat_b1", hp), "relu")
    z = _dense(hmid, pw("lat_w2", hp, dzp), pb("lat_b2", dzp), "linear")

    # ---- decode(): sigmoid(z_n @ z_n^T), z_n = F.normalize(z, p=2, dim=1) ----
    a_pred = _gram_sigmoid(z)

    # ---- IGAE decoder: three tanh GNN layers back to feat_dim ----
    d = _spmm(adjb, _dense(z, pw("dec_w1", dzp, 256), zeros(256), "tanh"))
    d = _spmm(adjb, _dense(d, pw("dec_w2", 256, 128), zeros(128), "tanh"))
    xprim_p = _spmm(adjb, _dense(d, pw("dec_w3", 128, fp), zeros(fp), "tanh"),
                    out_dtype=jnp.float32)
    x_prim = xprim_p[:, :f]
    return x_prim, a_pred


# ----------------------- parameters / reference / test -----------------------

def _glorot(key, shape):
    fan_in, fan_out = shape
    lim = (6.0 / (fan_in + fan_out)) ** 0.5
    return jax.random.uniform(key, shape, jnp.float32, -lim, lim)


def init_params(key, feat_dim, hidden_dim):
    ks = jax.random.split(key, 10)
    p = {}
    # IGAE_encoder(128, 256, 64, n_input=feat_dim)
    p["enc_w1"] = _glorot(ks[0], (feat_dim, 128))
    p["enc_w2"] = _glorot(ks[1], (128, 256))
    p["enc_w3"] = _glorot(ks[2], (256, 64))
    # LatentMappingLayer(64, hidden_dim, 64) — Linear weights stored (in, out)
    p["lat_w1"] = _glorot(ks[3], (64, hidden_dim))
    p["lat_b1"] = jax.random.uniform(ks[4], (1, hidden_dim), jnp.float32, -0.1, 0.1)
    p["lat_w2"] = _glorot(ks[5], (hidden_dim, 64))
    p["lat_b2"] = jax.random.uniform(ks[6], (1, 64), jnp.float32, -0.1, 0.1)
    # IGAE_decoder(64, 256, 128, n_input=feat_dim)
    p["dec_w1"] = _glorot(ks[7], (64, 256))
    p["dec_w2"] = _glorot(ks[8], (256, 128))
    p["dec_w3"] = _glorot(ks[9], (128, feat_dim))
    return p


def _reference(x, adj, p):
    """Pure-JAX reference mirroring the kernels' bf16-operand / f32-accum numerics."""
    bf16, f32 = jnp.bfloat16, jnp.float32
    mm = lambda a, b: jnp.dot(a.astype(bf16), b.astype(bf16),
                              preferred_element_type=f32)
    q = lambda a: a.astype(bf16).astype(f32)
    h = mm(adj, jnp.tanh(mm(x, p["enc_w1"])))
    h = mm(adj, jnp.tanh(mm(h, p["enc_w2"])))
    e = mm(adj, mm(h, p["enc_w3"]))
    hmid = jnp.maximum(mm(e, p["lat_w1"]) + q(p["lat_b1"]), 0.0)
    z = mm(hmid, p["lat_w2"]) + q(p["lat_b2"])
    zq = q(z)
    inv = lax.rsqrt(jnp.maximum(jnp.sum(zq * zq, 1, keepdims=True), 1e-24))
    zn = (zq * inv).astype(bf16)
    a_pred = jax.nn.sigmoid(jnp.dot(zn, zn.T, preferred_element_type=f32))
    d = mm(adj, jnp.tanh(mm(z, p["dec_w1"])))
    d = mm(adj, jnp.tanh(mm(d, p["dec_w2"])))
    x_prim = mm(adj, jnp.tanh(mm(d, p["dec_w3"])))
    return x_prim, a_pred


if __name__ == "__main__":
    N, FEAT, HIDDEN = 16, 32, 32

    key = jax.random.PRNGKey(0)
    k_x, k_m, k_a, k_p = jax.random.split(key, 4)

    x = jax.random.normal(k_x, (N, FEAT), jnp.float32)
    m = (jax.random.uniform(k_m, (N, FEAT)) > 0.3).astype(jnp.float32)  # mask (unused)

    # symmetric normalized adjacency with self loops: D^-1/2 (A + I) D^-1/2
    a = (jax.random.uniform(k_a, (N, N)) > 0.7).astype(jnp.float32)
    a = jnp.maximum(a, a.T) + jnp.eye(N, dtype=jnp.float32)
    d_inv_sqrt = 1.0 / jnp.sqrt(jnp.sum(a, axis=1))
    adj = a * d_inv_sqrt[:, None] * d_inv_sqrt[None, :]

    params = init_params(k_p, FEAT, HIDDEN)

    fwd = jax.jit(netg1_forward)
    x_prim, a_pred = fwd(x, m, adj, params)
    jax.block_until_ready((x_prim, a_pred))

    x_ref, a_ref = _reference(x, adj, params)
    assert x_prim.shape == (N, FEAT) and a_pred.shape == (N, N)
    assert x_prim.dtype == jnp.float32 and a_pred.dtype == jnp.float32
    assert jnp.allclose(x_prim, x_ref, atol=2e-3, rtol=2e-3)
    assert jnp.allclose(a_pred, a_ref, atol=2e-3, rtol=2e-3)

    print("KERNEL_OK")
</pallas_src>

<mosaic_0001>
module attributes {stable_mosaic.version = 11 : i64} {
  func.func @_dense_kernel(%arg0: i32, %arg1: memref<16x128xbf16, #tpu.memory_space<vmem>>, %arg2: memref<128x128xbf16, #tpu.memory_space<vmem>>, %arg3: memref<1x128xbf16, #tpu.memory_space<vmem>>, %arg4: memref<16x128xbf16, #tpu.memory_space<vmem>>) attributes {dimension_semantics = [#tpu.dimension_semantics<parallel>], iteration_bounds = array<i64: 1>, scalar_prefetch = 0 : i64, scratch_operands = 0 : i64, tpu.core_type = #tpu.core_type<tc>, window_params = [{transform_indices = @transform_0, window_bounds = array<i64: 16, 128>}, {pipeline_mode = #tpu.pipeline_mode<synchronous>, transform_indices = @transform_1, window_bounds = array<i64: 128, 128>}, {pipeline_mode = #tpu.pipeline_mode<synchronous>, transform_indices = @transform_2, window_bounds = array<i64: 1, 128>}, {transform_indices = @transform_3, window_bounds = array<i64: 16, 128>}]} {
    %c0 = arith.constant 0 : index
    %c0_0 = arith.constant 0 : index
    %0 = vector.load %arg1[%c0, %c0_0] : memref<16x128xbf16, #tpu.memory_space<vmem>>, vector<16x128xbf16>
    %c0_1 = arith.constant 0 : index
    %c0_2 = arith.constant 0 : index
    %1 = vector.load %arg2[%c0_1, %c0_2] : memref<128x128xbf16, #tpu.memory_space<vmem>>, vector<128x128xbf16>
    %cst = arith.constant dense<0.000000e+00> : vector<16x128xf32>
    %2 = tpu.matmul %0, %1, %cst {dimension_numbers = #tpu.dot_dimension_numbers<[1], [0], [0], [1], [0, 0, 1, 1], [], []>} : vector<16x128xbf16>, vector<128x128xbf16>, vector<16x128xf32> -> vector<16x128xf32>
    %c0_3 = arith.constant 0 : index
    %c0_4 = arith.constant 0 : index
    %3 = vector.load %arg3[%c0_3, %c0_4] : memref<1x128xbf16, #tpu.memory_space<vmem>>, vector<1x128xbf16>
    %4 = arith.extf %3 : vector<1x128xbf16> to vector<1x128xf32>
    %5 = vector.broadcast %4 : vector<1x128xf32> to vector<16x128xf32>
    %6 = arith.addf %2, %5 : vector<16x128xf32>
    %7 = math.tanh %6 : vector<16x128xf32>
    %8 = arith.truncf %7 : vector<16x128xf32> to vector<16x128xbf16>
    %c0_5 = arith.constant 0 : index
    %c0_6 = arith.constant 0 : index
    %9 = vector.load %arg4[%c0_5, %c0_6] : memref<16x128xbf16, #tpu.memory_space<vmem>>, vector<16x128xbf16>
    tpu.vector_store %arg4[%c0_5, %c0_6], %8 {strides = array<i32>} : memref<16x128xbf16, #tpu.memory_space<vmem>>, vector<16x128xbf16>,
    return
  }
  func.func @transform_0(%arg0: i32) -> (i32, i32) {
    %c0_i32 = arith.constant 0 : i32
    %c0_i32_0 = arith.constant 0 : i32
    return %arg0, %c0_i32 : i32, i32
  }
  func.func @transform_1(%arg0: i32) -> (i32, i32) {
    %c0_i32 = arith.constant 0 : i32
    %c0_i32_0 = arith.constant 0 : i32
    %c0_i32_1 = arith.constant 0 : i32
    return %c0_i32, %c0_i32_0 : i32, i32
  }
  func.func @transform_2(%arg0: i32) -> (i32, i32) {
    %c0_i32 = arith.constant 0 : i32
    %c0_i32_0 = arith.constant 0 : i32
    %c0_i32_1 = arith.constant 0 : i32
    return %c0_i32, %c0_i32_0 : i32, i32
  }
  func.func @transform_3(%arg0: i32) -> (i32, i32) {
    %c0_i32 = arith.constant 0 : i32
    %c0_i32_0 = arith.constant 0 : i32
    return %arg0, %c0_i32 : i32, i32
  }
}

module attributes {stable_mosaic.version = 11 : i64} {
  func.func @_dense_kernel(%arg0: i32, %arg1: memref<16x128xbf16, #tpu.memory_space<vmem>>, %arg2: memref<128x256xbf16, #tpu.memory_space<vmem>>, %arg3: memref<1x256xbf16, #tpu.memory_space<vmem>>, %arg4: memref<16x256xbf16, #tpu.memory_space<vmem>>) attributes {dimension_semantics = [#tpu.dimension_semantics<parallel>], iteration_bounds = array<i64: 1>, scalar_prefetch = 0 : i64, scratch_operands = 0 : i64, tpu.core_type = #tpu.core_type<tc>, window_params = [{transform_indices = @transform_0, window_bounds = array<i64: 16, 128>}, {pipeline_mode = #tpu.pipeline_mode<synchronous>, transform_indices = @transform_1, window_bounds = array<i64: 128, 256>}, {pipeline_mode = #tpu.pipeline_mode<synchronous>, transform_indices = @transform_2, window_bounds = array<i64: 1, 256>}, {transform_indices = @transform_3, window_bounds = array<i64: 16, 256>}]} {
    %c0 = arith.constant 0 : index
    %c0_0 = arith.constant 0 : index
    %0 = vector.load %arg1[%c0, %c0_0] : memref<16x128xbf16, #tpu.memory_space<vmem>>, vector<16x128xbf16>
    %c0_1 = arith.constant 0 : index
    %c0_2 = arith.constant 0 : index
    %1 = vector.load %arg2[%c0_1, %c0_2] : memref<128x256xbf16, #tpu.memory_space<vmem>>, vector<128x256xbf16>
    %cst = arith.constant dense<0.000000e+00> : vector<16x256xf32>
    %2 = tpu.matmul %0, %1, %cst {dimension_numbers = #tpu.dot_dimension_numbers<[1], [0], [0], [1], [0, 0, 1, 1], [], []>} : vector<16x128xbf16>, vector<128x256xbf16>, vector<16x256xf32> -> vector<16x256xf32>
    %c0_3 = arith.constant 0 : index
    %c0_4 = arith.constant 0 : index
    %3 = vector.load %arg3[%c0_3, %c0_4] : memref<1x256xbf16, #tpu.memory_space<vmem>>, vector<1x256xbf16>
    %4 = arith.extf %3 : vector<1x256xbf16> to vector<1x256xf32>
    %5 = vector.broadcast %4 : vector<1x256xf32> to vector<16x256xf32>
    %6 = arith.addf %2, %5 : vector<16x256xf32>
    %7 = math.tanh %6 : vector<16x256xf32>
    %8 = arith.truncf %7 : vector<16x256xf32> to vector<16x256xbf16>
    %c0_5 = arith.constant 0 : index
    %c0_6 = arith.constant 0 : index
    %9 = vector.load %arg4[%c0_5, %c0_6] : memref<16x256xbf16, #tpu.memory_space<vmem>>, vector<16x256xbf16>
    tpu.vector_store %arg4[%c0_5, %c0_6], %8 {strides = array<i32>} : memref<16x256xbf16, #tpu.memory_space<vmem>>, vector<16x256xbf16>,
    return
  }
  func.func @transform_0(%arg0: i32) -> (i32, i32) {
    %c0_i32 = arith.constant 0 : i32
    %c0_i32_0 = arith.constant 0 : i32
    return %arg0, %c0_i32 : i32, i32
  }
  func.func @transform_1(%arg0: i32) -> (i32, i32) {
    %c0_i32 = arith.constant 0 : i32
    %c0_i32_0 = arith.constant 0 : i32
    %c0_i32_1 = arith.constant 0 : i32
    return %c0_i32, %c0_i32_0 : i32, i32
  }
  func.func @transform_2(%arg0: i32) -> (i32, i32) {
    %c0_i32 = arith.constant 0 : i32
    %c0_i32_0 = arith.constant 0 : i32
    %c0_i32_1 = arith.constant 0 : i32
    return %c0_i32, %c0_i32_0 : i32, i32
  }
  func.func @transform_3(%arg0: i32) -> (i32, i32) {
    %c0_i32 = arith.constant 0 : i32
    %c0_i32_0 = arith.constant 0 : i32
    return %arg0, %c0_i32 : i32, i32
  }
}

module attributes {stable_mosaic.version = 11 : i64} {
  func.func @_spmm_kernel(%arg0: i32, %arg1: i32, %arg2: memref<16x16xbf16, #tpu.memory_space<vmem>>, %arg3: memref<16x128xbf16, #tpu.memory_space<vmem>>, %arg4: memref<16x128xbf16, #tpu.memory_space<vmem>>, %arg5: memref<16x128xf32, #tpu.memory_space<vmem>>) attributes {dimension_semantics = [#tpu.dimension_semantics<parallel>, #tpu.dimension_semantics<arbitrary>], iteration_bounds = array<i64: 1, 1>, scalar_prefetch = 0 : i64, scratch_operands = 1 : i64, tpu.core_type = #tpu.core_type<tc>, window_params = [{transform_indices = @transform_0, window_bounds = array<i64: 16, 16>}, {transform_indices = @transform_1, window_bounds = array<i64: 16, 128>}, {transform_indices = @transform_2, window_bounds = array<i64: 16, 128>}]} {
    %c0_i32 = arith.constant 0 : i32
    %0 = arith.cmpi eq, %arg1, %c0_i32 : i32
    %1 = arith.extui %0 : i1 to i32
    %c0_i32_0 = arith.constant 0 : i32
    %2 = arith.cmpi ne, %1, %c0_i32_0 : i32
    scf.if %2 {
      %cst_10 = arith.constant 0.000000e+00 : f32
      %12 = vector.broadcast %cst_10 : f32 to vector<16x128xf32>
      %c0_11 = arith.constant 0 : index
      %c0_12 = arith.constant 0 : index
      %13 = vector.load %arg5[%c0_11, %c0_12] : memref<16x128xf32, #tpu.memory_space<vmem>>, vector<16x128xf32>
      tpu.vector_store %arg5[%c0_11, %c0_12], %12 {strides = array<i32>} : memref<16x128xf32, #tpu.memory_space<vmem>>, vector<16x128xf32>,
    } else {
    }
    %c0 = arith.constant 0 : index
    %c0_1 = arith.constant 0 : index
    %3 = vector.load %arg5[%c0, %c0_1] : memref<16x128xf32, #tpu.memory_space<vmem>>, vector<16x128xf32>
    %c0_2 = arith.constant 0 : index
    %c0_3 = arith.constant 0 : index
    %4 = vector.load %arg2[%c0_2, %c0_3] : memref<16x16xbf16, #tpu.memory_space<vmem>>, vector<16x16xbf16>
    %c0_4 = arith.constant 0 : index
    %c0_5 = arith.constant 0 : index
    %5 = vector.load %arg3[%c0_4, %c0_5] : memref<16x128xbf16, #tpu.memory_space<vmem>>, vector<16x128xbf16>
    %cst = arith.constant dense<0.000000e+00> : vector<16x128xf32>
    %6 = tpu.matmul %4, %5, %cst {dimension_numbers = #tpu.dot_dimension_numbers<[1], [0], [0], [1], [0, 0, 1, 1], [], []>} : vector<16x16xbf16>, vector<16x128xbf16>, vector<16x128xf32> -> vector<16x128xf32>
    %7 = arith.addf %3, %6 : vector<16x128xf32>
    %c0_6 = arith.constant 0 : index
    %c0_7 = arith.constant 0 : index
    %8 = vector.load %arg5[%c0_6, %c0_7] : memref<16x128xf32, #tpu.memory_space<vmem>>, vector<16x128xf32>
    tpu.vector_store %arg5[%c0_6, %c0_7], %7 {strides = array<i32>} : memref<16x128xf32, #tpu.memory_space<vmem>>, vector<16x128xf32>,
    %c0_i32_8 = arith.constant 0 : i32
    %9 = arith.cmpi eq, %arg1, %c0_i32_8 : i32
    %10 = arith.extui %9 : i1 to i32
    %c0_i32_9 = arith.constant 0 : i32
    %11 = arith.cmpi ne, %10, %c0_i32_9 : i32
    scf.if %11 {
      %c0_10 = arith.constant 0 : index
      %c0_11 = arith.constant 0 : index
      %12 = vector.load %arg5[%c0_10, %c0_11] : memref<16x128xf32, #tpu.memory_space<vmem>>, vector<16x128xf32>
      %13 = arith.truncf %12 : vector<16x128xf32> to vector<16x128xbf16>
      %c0_12 = arith.constant 0 : index
      %c0_13 = arith.constant 0 : index
      %14 = vector.load %arg4[%c0_12, %c0_13] : memref<16x128xbf16, #tpu.memory_space<vmem>>, vector<16x128xbf16>
      tpu.vector_store %arg4[%c0_12, %c0_13], %13 {strides = array<i32>} : memref<16x128xbf16, #tpu.memory_space<vmem>>, vector<16x128xbf16>,
    } else {
    }
    return
  }
  func.func @transform_0(%arg0: i32, %arg1: i32) -> (i32, i32) {
    %c0_i32 = arith.constant 0 : i32
    return %arg0, %arg1 : i32, i32
  }
  func.func @transform_1(%arg0: i32, %arg1: i32) -> (i32, i32) {
    %c0_i32 = arith.constant 0 : i32
    %c0_i32_0 = arith.constant 0 : i32
    return %arg1, %c0_i32 : i32, i32
  }
  func.func @transform_2(%arg0: i32, %arg1: i32) -> (i32, i32) {
    %c0_i32 = arith.constant 0 : i32
    %c0_i32_0 = arith.constant 0 : i32
    return %arg0, %c0_i32 : i32, i32
  }
}

module attributes {stable_mosaic.version = 11 : i64} {
  func.func @_spmm_kernel(%arg0: i32, %arg1: i32, %arg2: memref<16x16xbf16, #tpu.memory_space<vmem>>, %arg3: memref<16x256xbf16, #tpu.memory_space<vmem>>, %arg4: memref<16x256xbf16, #tpu.memory_space<vmem>>, %arg5: memref<16x256xf32, #tpu.memory_space<vmem>>) attributes {dimension_semantics = [#tpu.dimension_semantics<parallel>, #tpu.dimension_semantics<arbitrary>], iteration_bounds = array<i64: 1, 1>, scalar_prefetch = 0 : i64, scratch_operands = 1 : i64, tpu.core_type = #tpu.core_type<tc>, window_params = [{transform_indices = @transform_0, window_bounds = array<i64: 16, 16>}, {transform_indices = @transform_1, window_bounds = array<i64: 16, 256>}, {transform_indices = @transform_2, window_bounds = array<i64: 16, 256>}]} {
    %c0_i32 = arith.constant 0 : i32
    %0 = arith.cmpi eq, %arg1, %c0_i32 : i32
    %1 = arith.extui %0 : i1 to i32
    %c0_i32_0 = arith.constant 0 : i32
    %2 = arith.cmpi ne, %1, %c0_i32_0 : i32
    scf.if %2 {
      %cst_10 = arith.constant 0.000000e+00 : f32
      %12 = vector.broadcast %cst_10 : f32 to vector<16x256xf32>
      %c0_11 = arith.constant 0 : index
      %c0_12 = arith.constant 0 : index
      %13 = vector.load %arg5[%c0_11, %c0_12] : memref<16x256xf32, #tpu.memory_space<vmem>>, vector<16x256xf32>
      tpu.vector_store %arg5[%c0_11, %c0_12], %12 {strides = array<i32>} : memref<16x256xf32, #tpu.memory_space<vmem>>, vector<16x256xf32>,
    } else {
    }
    %c0 = arith.constant 0 : index
    %c0_1 = arith.constant 0 : index
    %3 = vector.load %arg5[%c0, %c0_1] : memref<16x256xf32, #tpu.memory_space<vmem>>, vector<16x256xf32>
    %c0_2 = arith.constant 0 : index
    %c0_3 = arith.constant 0 : index
    %4 = vector.load %arg2[%c0_2, %c0_3] : memref<16x16xbf16, #tpu.memory_space<vmem>>, vector<16x16xbf16>
    %c0_4 = arith.constant 0 : index
    %c0_5 = arith.constant 0 : index
    %5 = vector.load %arg3[%c0_4, %c0_5] : memref<16x256xbf16, #tpu.memory_space<vmem>>, vector<16x256xbf16>
    %cst = arith.constant dense<0.000000e+00> : vector<16x256xf32>
    %6 = tpu.matmul %4, %5, %cst {dimension_numbers = #tpu.dot_dimension_numbers<[1], [0], [0], [1], [0, 0, 1, 1], [], []>} : vector<16x16xbf16>, vector<16x256xbf16>, vector<16x256xf32> -> vector<16x256xf32>
    %7 = arith.addf %3, %6 : vector<16x256xf32>
    %c0_6 = arith.constant 0 : index
    %c0_7 = arith.constant 0 : index
    %8 = vector.load %arg5[%c0_6, %c0_7] : memref<16x256xf32, #tpu.memory_space<vmem>>, vector<16x256xf32>
    tpu.vector_store %arg5[%c0_6, %c0_7], %7 {strides = array<i32>} : memref<16x256xf32, #tpu.memory_space<vmem>>, vector<16x256xf32>,
    %c0_i32_8 = arith.constant 0 : i32
    %9 = arith.cmpi eq, %arg1, %c0_i32_8 : i32
    %10 = arith.extui %9 : i1 to i32
    %c0_i32_9 = arith.constant 0 : i32
    %11 = arith.cmpi ne, %10, %c0_i32_9 : i32
    scf.if %11 {
      %c0_10 = arith.constant 0 : index
      %c0_11 = arith.constant 0 : index
      %12 = vector.load %arg5[%c0_10, %c0_11] : memref<16x256xf32, #tpu.memory_space<vmem>>, vector<16x256xf32>
      %13 = arith.truncf %12 : vector<16x256xf32> to vector<16x256xbf16>
      %c0_12 = arith.constant 0 : index
      %c0_13 = arith.constant 0 : index
      %14 = vector.load %arg4[%c0_12, %c0_13] : memref<16x256xbf16, #tpu.memory_space<vmem>>, vector<16x256xbf16>
      tpu.vector_store %arg4[%c0_12, %c0_13], %13 {strides = array<i32>} : memref<16x256xbf16, #tpu.memory_space<vmem>>, vector<16x256xbf16>,
    } else {
    }
    return
  }
  func.func @transform_0(%arg0: i32, %arg1: i32) -> (i32, i32) {
    %c0_i32 = arith.constant 0 : i32
    return %arg0, %arg1 : i32, i32
  }
  func.func @transform_1(%arg0: i32, %arg1: i32) -> (i32, i32) {
    %c0_i32 = arith.constant 0 : i32
    %c0_i32_0 = arith.constant 0 : i32
    return %arg1, %c0_i32 : i32, i32
  }
  func.func @transform_2(%arg0: i32, %arg1: i32) -> (i32, i32) {
    %c0_i32 = arith.constant 0 : i32
    %c0_i32_0 = arith.constant 0 : i32
    return %arg0, %c0_i32 : i32, i32
  }
}

module attributes {stable_mosaic.version = 11 : i64} {
  func.func @_dense_kernel(%arg0: i32, %arg1: memref<16x256xbf16, #tpu.memory_space<vmem>>, %arg2: memref<256x128xbf16, #tpu.memory_space<vmem>>, %arg3: memref<1x128xbf16, #tpu.memory_space<vmem>>, %arg4: memref<16x128xbf16, #tpu.memory_space<vmem>>) attributes {dimension_semantics = [#tpu.dimension_semantics<parallel>], iteration_bounds = array<i64: 1>, scalar_prefetch = 0 : i64, scratch_operands = 0 : i64, tpu.core_type = #tpu.core_type<tc>, window_params = [{transform_indices = @transform_0, window_bounds = array<i64: 16, 256>}, {pipeline_mode = #tpu.pipeline_mode<synchronous>, transform_indices = @transform_1, window_bounds = array<i64: 256, 128>}, {pipeline_mode = #tpu.pipeline_mode<synchronous>, transform_indices = @transform_2, window_bounds = array<i64: 1, 128>}, {transform_indices = @transform_3, window_bounds = array<i64: 16, 128>}]} {
    %c0 = arith.constant 0 : index
    %c0_0 = arith.constant 0 : index
    %0 = vector.load %arg1[%c0, %c0_0] : memref<16x256xbf16, #tpu.memory_space<vmem>>, vector<16x256xbf16>
    %c0_1 = arith.constant 0 : index
    %c0_2 = arith.constant 0 : index
    %1 = vector.load %arg2[%c0_1, %c0_2] : memref<256x128xbf16, #tpu.memory_space<vmem>>, vector<256x128xbf16>
    %cst = arith.constant dense<0.000000e+00> : vector<16x128xf32>
    %2 = tpu.matmul %0, %1, %cst {dimension_numbers = #tpu.dot_dimension_numbers<[1], [0], [0], [1], [0, 0, 1, 1], [], []>} : vector<16x256xbf16>, vector<256x128xbf16>, vector<16x128xf32> -> vector<16x128xf32>
    %c0_3 = arith.constant 0 : index
    %c0_4 = arith.constant 0 : index
    %3 = vector.load %arg3[%c0_3, %c0_4] : memref<1x128xbf16, #tpu.memory_space<vmem>>, vector<1x128xbf16>
    %4 = arith.extf %3 : vector<1x128xbf16> to vector<1x128xf32>
    %5 = vector.broadcast %4 : vector<1x128xf32> to vector<16x128xf32>
    %6 = arith.addf %2, %5 : vector<16x128xf32>
    %7 = arith.truncf %6 : vector<16x128xf32> to vector<16x128xbf16>
    %c0_5 = arith.constant 0 : index
    %c0_6 = arith.constant 0 : index
    %8 = vector.load %arg4[%c0_5, %c0_6] : memref<16x128xbf16, #tpu.memory_space<vmem>>, vector<16x128xbf16>
    tpu.vector_store %arg4[%c0_5, %c0_6], %7 {strides = array<i32>} : memref<16x128xbf16, #tpu.memory_space<vmem>>, vector<16x128xbf16>,
    return
  }
  func.func @transform_0(%arg0: i32) -> (i32, i32) {
    %c0_i32 = arith.constant 0 : i32
    %c0_i32_0 = arith.constant 0 : i32
    return %arg0, %c0_i32 : i32, i32
  }
  func.func @transform_1(%arg0: i32) -> (i32, i32) {
    %c0_i32 = arith.constant 0 : i32
    %c0_i32_0 = arith.constant 0 : i32
    %c0_i32_1 = arith.constant 0 : i32
    return %c0_i32, %c0_i32_0 : i32, i32
  }
  func.func @transform_2(%arg0: i32) -> (i32, i32) {
    %c0_i32 = arith.constant 0 : i32
    %c0_i32_0 = arith.constant 0 : i32
    %c0_i32_1 = arith.constant 0 : i32
    return %c0_i32, %c0_i32_0 : i32, i32
  }
  func.func @transform_3(%arg0: i32) -> (i32, i32) {
    %c0_i32 = arith.constant 0 : i32
    %c0_i32_0 = arith.constant 0 : i32
    return %arg0, %c0_i32 : i32, i32
  }
}

module attributes {stable_mosaic.version = 11 : i64} {
  func.func @_dense_kernel(%arg0: i32, %arg1: memref<16x128xbf16, #tpu.memory_space<vmem>>, %arg2: memref<128x128xbf16, #tpu.memory_space<vmem>>, %arg3: memref<1x128xbf16, #tpu.memory_space<vmem>>, %arg4: memref<16x128xbf16, #tpu.memory_space<vmem>>) attributes {dimension_semantics = [#tpu.dimension_semantics<parallel>], iteration_bounds = array<i64: 1>, scalar_prefetch = 0 : i64, scratch_operands = 0 : i64, tpu.core_type = #tpu.core_type<tc>, window_params = [{transform_indices = @transform_0, window_bounds = array<i64: 16, 128>}, {pipeline_mode = #tpu.pipeline_mode<synchronous>, transform_indices = @transform_1, window_bounds = array<i64: 128, 128>}, {pipeline_mode = #tpu.pipeline_mode<synchronous>, transform_indices = @transform_2, window_bounds = array<i64: 1, 128>}, {transform_indices = @transform_3, window_bounds = array<i64: 16, 128>}]} {
    %c0 = arith.constant 0 : index
    %c0_0 = arith.constant 0 : index
    %0 = vector.load %arg1[%c0, %c0_0] : memref<16x128xbf16, #tpu.memory_space<vmem>>, vector<16x128xbf16>
    %c0_1 = arith.constant 0 : index
    %c0_2 = arith.constant 0 : index
    %1 = vector.load %arg2[%c0_1, %c0_2] : memref<128x128xbf16, #tpu.memory_space<vmem>>, vector<128x128xbf16>
    %cst = arith.constant dense<0.000000e+00> : vector<16x128xf32>
    %2 = tpu.matmul %0, %1, %cst {dimension_numbers = #tpu.dot_dimension_numbers<[1], [0], [0], [1], [0, 0, 1, 1], [], []>} : vector<16x128xbf16>, vector<128x128xbf16>, vector<16x128xf32> -> vector<16x128xf32>
    %c0_3 = arith.constant 0 : index
    %c0_4 = arith.constant 0 : index
    %3 = vector.load %arg3[%c0_3, %c0_4] : memref<1x128xbf16, #tpu.memory_space<vmem>>, vector<1x128xbf16>
    %4 = arith.extf %3 : vector<1x128xbf16> to vector<1x128xf32>
    %5 = vector.broadcast %4 : vector<1x128xf32> to vector<16x128xf32>
    %6 = arith.addf %2, %5 : vector<16x128xf32>
    %cst_5 = arith.constant 0.000000e+00 : f32
    %7 = vector.broadcast %cst_5 : f32 to vector<16x128xf32>
    %8 = arith.maximumf %6, %7 : vector<16x128xf32>
    %9 = arith.truncf %8 : vector<16x128xf32> to vector<16x128xbf16>
    %c0_6 = arith.constant 0 : index
    %c0_7 = arith.constant 0 : index
    %10 = vector.load %arg4[%c0_6, %c0_7] : memref<16x128xbf16, #tpu.memory_space<vmem>>, vector<16x128xbf16>
    tpu.vector_store %arg4[%c0_6, %c0_7], %9 {strides = array<i32>} : memref<16x128xbf16, #tpu.memory_space<vmem>>, vector<16x128xbf16>,
    return
  }
  func.func @transform_0(%arg0: i32) -> (i32, i32) {
    %c0_i32 = arith.constant 0 : i32
    %c0_i32_0 = arith.constant 0 : i32
    return %arg0, %c0_i32 : i32, i32
  }
  func.func @transform_1(%arg0: i32) -> (i32, i32) {
    %c0_i32 = arith.constant 0 : i32
    %c0_i32_0 = arith.constant 0 : i32
    %c0_i32_1 = arith.constant 0 : i32
    return %c0_i32, %c0_i32_0 : i32, i32
  }
  func.func @transform_2(%arg0: i32) -> (i32, i32) {
    %c0_i32 = arith.constant 0 : i32
    %c0_i32_0 = arith.constant 0 : i32
    %c0_i32_1 = arith.constant 0 : i32
    return %c0_i32, %c0_i32_0 : i32, i32
  }
  func.func @transform_3(%arg0: i32) -> (i32, i32) {
    %c0_i32 = arith.constant 0 : i32
    %c0_i32_0 = arith.constant 0 : i32
    return %arg0, %c0_i32 : i32, i32
  }
}

module attributes {stable_mosaic.version = 11 : i64} {
  func.func @_dense_kernel(%arg0: i32, %arg1: memref<16x256xbf16, #tpu.memory_space<vmem>>, %arg2: memref<256x128xbf16, #tpu.memory_space<vmem>>, %arg3: memref<1x128xbf16, #tpu.memory_space<vmem>>, %arg4: memref<16x128xbf16, #tpu.memory_space<vmem>>) attributes {dimension_semantics = [#tpu.dimension_semantics<parallel>], iteration_bounds = array<i64: 1>, scalar_prefetch = 0 : i64, scratch_operands = 0 : i64, tpu.core_type = #tpu.core_type<tc>, window_params = [{transform_indices = @transform_0, window_bounds = array<i64: 16, 256>}, {pipeline_mode = #tpu.pipeline_mode<synchronous>, transform_indices = @transform_1, window_bounds = array<i64: 256, 128>}, {pipeline_mode = #tpu.pipeline_mode<synchronous>, transform_indices = @transform_2, window_bounds = array<i64: 1, 128>}, {transform_indices = @transform_3, window_bounds = array<i64: 16, 128>}]} {
    %c0 = arith.constant 0 : index
    %c0_0 = arith.constant 0 : index
    %0 = vector.load %arg1[%c0, %c0_0] : memref<16x256xbf16, #tpu.memory_space<vmem>>, vector<16x256xbf16>
    %c0_1 = arith.constant 0 : index
    %c0_2 = arith.constant 0 : index
    %1 = vector.load %arg2[%c0_1, %c0_2] : memref<256x128xbf16, #tpu.memory_space<vmem>>, vector<256x128xbf16>
    %cst = arith.constant dense<0.000000e+00> : vector<16x128xf32>
    %2 = tpu.matmul %0, %1, %cst {dimension_numbers = #tpu.dot_dimension_numbers<[1], [0], [0], [1], [0, 0, 1, 1], [], []>} : vector<16x256xbf16>, vector<256x128xbf16>, vector<16x128xf32> -> vector<16x128xf32>
    %c0_3 = arith.constant 0 : index
    %c0_4 = arith.constant 0 : index
    %3 = vector.load %arg3[%c0_3, %c0_4] : memref<1x128xbf16, #tpu.memory_space<vmem>>, vector<1x128xbf16>
    %4 = arith.extf %3 : vector<1x128xbf16> to vector<1x128xf32>
    %5 = vector.broadcast %4 : vector<1x128xf32> to vector<16x128xf32>
    %6 = arith.addf %2, %5 : vector<16x128xf32>
    %7 = math.tanh %6 : vector<16x128xf32>
    %8 = arith.truncf %7 : vector<16x128xf32> to vector<16x128xbf16>
    %c0_5 = arith.constant 0 : index
    %c0_6 = arith.constant 0 : index
    %9 = vector.load %arg4[%c0_5, %c0_6] : memref<16x128xbf16, #tpu.memory_space<vmem>>, vector<16x128xbf16>
    tpu.vector_store %arg4[%c0_5, %c0_6], %8 {strides = array<i32>} : memref<16x128xbf16, #tpu.memory_space<vmem>>, vector<16x128xbf16>,
    return
  }
  func.func @transform_0(%arg0: i32) -> (i32, i32) {
    %c0_i32 = arith.constant 0 : i32
    %c0_i32_0 = arith.constant 0 : i32
    return %arg0, %c0_i32 : i32, i32
  }
  func.func @transform_1(%arg0: i32) -> (i32, i32) {
    %c0_i32 = arith.constant 0 : i32
    %c0_i32_0 = arith.constant 0 : i32
    %c0_i32_1 = arith.constant 0 : i32
    return %c0_i32, %c0_i32_0 : i32, i32
  }
  func.func @transform_2(%arg0: i32) -> (i32, i32) {
    %c0_i32 = arith.constant 0 : i32
    %c0_i32_0 = arith.constant 0 : i32
    %c0_i32_1 = arith.constant 0 : i32
    return %c0_i32, %c0_i32_0 : i32, i32
  }
  func.func @transform_3(%arg0: i32) -> (i32, i32) {
    %c0_i32 = arith.constant 0 : i32
    %c0_i32_0 = arith.constant 0 : i32
    return %arg0, %c0_i32 : i32, i32
  }
}

module attributes {stable_mosaic.version = 11 : i64} {
  func.func @_dense_kernel(%arg0: i32, %arg1: memref<16x128xbf16, #tpu.memory_space<vmem>>, %arg2: memref<128x128xbf16, #tpu.memory_space<vmem>>, %arg3: memref<1x128xbf16, #tpu.memory_space<vmem>>, %arg4: memref<16x128xbf16, #tpu.memory_space<vmem>>) attributes {dimension_semantics = [#tpu.dimension_semantics<parallel>], iteration_bounds = array<i64: 1>, scalar_prefetch = 0 : i64, scratch_operands = 0 : i64, tpu.core_type = #tpu.core_type<tc>, window_params = [{transform_indices = @transform_0, window_bounds = array<i64: 16, 128>}, {pipeline_mode = #tpu.pipeline_mode<synchronous>, transform_indices = @transform_1, window_bounds = array<i64: 128, 128>}, {pipeline_mode = #tpu.pipeline_mode<synchronous>, transform_indices = @transform_2, window_bounds = array<i64: 1, 128>}, {transform_indices = @transform_3, window_bounds = array<i64: 16, 128>}]} {
    %c0 = arith.constant 0 : index
    %c0_0 = arith.constant 0 : index
    %0 = vector.load %arg1[%c0, %c0_0] : memref<16x128xbf16, #tpu.memory_space<vmem>>, vector<16x128xbf16>
    %c0_1 = arith.constant 0 : index
    %c0_2 = arith.constant 0 : index
    %1 = vector.load %arg2[%c0_1, %c0_2] : memref<128x128xbf16, #tpu.memory_space<vmem>>, vector<128x128xbf16>
    %cst = arith.constant dense<0.000000e+00> : vector<16x128xf32>
    %2 = tpu.matmul %0, %1, %cst {dimension_numbers = #tpu.dot_dimension_numbers<[1], [0], [0], [1], [0, 0, 1, 1], [], []>} : vector<16x128xbf16>, vector<128x128xbf16>, vector<16x128xf32> -> vector<16x128xf32>
    %c0_3 = arith.constant 0 : index
    %c0_4 = arith.constant 0 : index
    %3 = vector.load %arg3[%c0_3, %c0_4] : memref<1x128xbf16, #tpu.memory_space<vmem>>, vector<1x128xbf16>
    %4 = arith.extf %3 : vector<1x128xbf16> to vector<1x128xf32>
    %5 = vector.broadcast %4 : vector<1x128xf32> to vector<16x128xf32>
    %6 = arith.addf %2, %5 : vector<16x128xf32>
    %7 = arith.truncf %6 : vector<16x128xf32> to vector<16x128xbf16>
    %c0_5 = arith.constant 0 : index
    %c0_6 = arith.constant 0 : index
    %8 = vector.load %arg4[%c0_5, %c0_6] : memref<16x128xbf16, #tpu.memory_space<vmem>>, vector<16x128xbf16>
    tpu.vector_store %arg4[%c0_5, %c0_6], %7 {strides = array<i32>} : memref<16x128xbf16, #tpu.memory_space<vmem>>, vector<16x128xbf16>,
    return
  }
  func.func @transform_0(%arg0: i32) -> (i32, i32) {
    %c0_i32 = arith.constant 0 : i32
    %c0_i32_0 = arith.constant 0 : i32
    return %arg0, %c0_i32 : i32, i32
  }
  func.func @transform_1(%arg0: i32) -> (i32, i32) {
    %c0_i32 = arith.constant 0 : i32
    %c0_i32_0 = arith.constant 0 : i32
    %c0_i32_1 = arith.constant 0 : i32
    return %c0_i32, %c0_i32_0 : i32, i32
  }
  func.func @transform_2(%arg0: i32) -> (i32, i32) {
    %c0_i32 = arith.constant 0 : i32
    %c0_i32_0 = arith.constant 0 : i32
    %c0_i32_1 = arith.constant 0 : i32
    return %c0_i32, %c0_i32_0 : i32, i32
  }
  func.func @transform_3(%arg0: i32) -> (i32, i32) {
    %c0_i32 = arith.constant 0 : i32
    %c0_i32_0 = arith.constant 0 : i32
    return %arg0, %c0_i32 : i32, i32
  }
}

module attributes {stable_mosaic.version = 11 : i64} {
  func.func @_spmm_kernel(%arg0: i32, %arg1: i32, %arg2: memref<16x16xbf16, #tpu.memory_space<vmem>>, %arg3: memref<16x128xbf16, #tpu.memory_space<vmem>>, %arg4: memref<16x128xf32, #tpu.memory_space<vmem>>, %arg5: memref<16x128xf32, #tpu.memory_space<vmem>>) attributes {dimension_semantics = [#tpu.dimension_semantics<parallel>, #tpu.dimension_semantics<arbitrary>], iteration_bounds = array<i64: 1, 1>, scalar_prefetch = 0 : i64, scratch_operands = 1 : i64, tpu.core_type = #tpu.core_type<tc>, window_params = [{transform_indices = @transform_0, window_bounds = array<i64: 16, 16>}, {transform_indices = @transform_1, window_bounds = array<i64: 16, 128>}, {transform_indices = @transform_2, window_bounds = array<i64: 16, 128>}]} {
    %c0_i32 = arith.constant 0 : i32
    %0 = arith.cmpi eq, %arg1, %c0_i32 : i32
    %1 = arith.extui %0 : i1 to i32
    %c0_i32_0 = arith.constant 0 : i32
    %2 = arith.cmpi ne, %1, %c0_i32_0 : i32
    scf.if %2 {
      %cst_10 = arith.constant 0.000000e+00 : f32
      %12 = vector.broadcast %cst_10 : f32 to vector<16x128xf32>
      %c0_11 = arith.constant 0 : index
      %c0_12 = arith.constant 0 : index
      %13 = vector.load %arg5[%c0_11, %c0_12] : memref<16x128xf32, #tpu.memory_space<vmem>>, vector<16x128xf32>
      tpu.vector_store %arg5[%c0_11, %c0_12], %12 {strides = array<i32>} : memref<16x128xf32, #tpu.memory_space<vmem>>, vector<16x128xf32>,
    } else {
    }
    %c0 = arith.constant 0 : index
    %c0_1 = arith.constant 0 : index
    %3 = vector.load %arg5[%c0, %c0_1] : memref<16x128xf32, #tpu.memory_space<vmem>>, vector<16x128xf32>
    %c0_2 = arith.constant 0 : index
    %c0_3 = arith.constant 0 : index
    %4 = vector.load %arg2[%c0_2, %c0_3] : memref<16x16xbf16, #tpu.memory_space<vmem>>, vector<16x16xbf16>
    %c0_4 = arith.constant 0 : index
    %c0_5 = arith.constant 0 : index
    %5 = vector.load %arg3[%c0_4, %c0_5] : memref<16x128xbf16, #tpu.memory_space<vmem>>, vector<16x128xbf16>
    %cst = arith.constant dense<0.000000e+00> : vector<16x128xf32>
    %6 = tpu.matmul %4, %5, %cst {dimension_numbers = #tpu.dot_dimension_numbers<[1], [0], [0], [1], [0, 0, 1, 1], [], []>} : vector<16x16xbf16>, vector<16x128xbf16>, vector<16x128xf32> -> vector<16x128xf32>
    %7 = arith.addf %3, %6 : vector<16x128xf32>
    %c0_6 = arith.constant 0 : index
    %c0_7 = arith.constant 0 : index
    %8 = vector.load %arg5[%c0_6, %c0_7] : memref<16x128xf32, #tpu.memory_space<vmem>>, vector<16x128xf32>
    tpu.vector_store %arg5[%c0_6, %c0_7], %7 {strides = array<i32>} : memref<16x128xf32, #tpu.memory_space<vmem>>, vector<16x128xf32>,
    %c0_i32_8 = arith.constant 0 : i32
    %9 = arith.cmpi eq, %arg1, %c0_i32_8 : i32
    %10 = arith.extui %9 : i1 to i32
    %c0_i32_9 = arith.constant 0 : i32
    %11 = arith.cmpi ne, %10, %c0_i32_9 : i32
    scf.if %11 {
      %c0_10 = arith.constant 0 : index
      %c0_11 = arith.constant 0 : index
      %12 = vector.load %arg5[%c0_10, %c0_11] : memref<16x128xf32, #tpu.memory_space<vmem>>, vector<16x128xf32>
      %c0_12 = arith.constant 0 : index
      %c0_13 = arith.constant 0 : index
      %13 = vector.load %arg4[%c0_12, %c0_13] : memref<16x128xf32, #tpu.memory_space<vmem>>, vector<16x128xf32>
      tpu.vector_store %arg4[%c0_12, %c0_13], %12 {strides = array<i32>} : memref<16x128xf32, #tpu.memory_space<vmem>>, vector<16x128xf32>,
    } else {
    }
    return
  }
  func.func @transform_0(%arg0: i32, %arg1: i32) -> (i32, i32) {
    %c0_i32 = arith.constant 0 : i32
    return %arg0, %arg1 : i32, i32
  }
  func.func @transform_1(%arg0: i32, %arg1: i32) -> (i32, i32) {
    %c0_i32 = arith.constant 0 : i32
    %c0_i32_0 = arith.constant 0 : i32
    return %arg1, %c0_i32 : i32, i32
  }
  func.func @transform_2(%arg0: i32, %arg1: i32) -> (i32, i32) {
    %c0_i32 = arith.constant 0 : i32
    %c0_i32_0 = arith.constant 0 : i32
    return %arg0, %c0_i32 : i32, i32
  }
}

module attributes {stable_mosaic.version = 11 : i64} {
  func.func @_gram_kernel(%arg0: i32, %arg1: memref<16x128xbf16, #tpu.memory_space<vmem>>, %arg2: memref<16x128xbf16, #tpu.memory_space<vmem>>, %arg3: memref<16x16xf32, #tpu.memory_space<vmem>>) attributes {dimension_semantics = [#tpu.dimension_semantics<parallel>], iteration_bounds = array<i64: 1>, scalar_prefetch = 0 : i64, scratch_operands = 0 : i64, tpu.core_type = #tpu.core_type<tc>, window_params = [{transform_indices = @transform_0, window_bounds = array<i64: 16, 128>}, {pipeline_mode = #tpu.pipeline_mode<synchronous>, transform_indices = @transform_1, window_bounds = array<i64: 16, 128>}, {transform_indices = @transform_2, window_bounds = array<i64: 16, 16>}]} {
    %c0 = arith.constant 0 : index
    %c0_0 = arith.constant 0 : index
    %0 = vector.load %arg1[%c0, %c0_0] : memref<16x128xbf16, #tpu.memory_space<vmem>>, vector<16x128xbf16>
    %1 = arith.extf %0 : vector<16x128xbf16> to vector<16x128xf32>
    %c0_1 = arith.constant 0 : index
    %c0_2 = arith.constant 0 : index
    %2 = vector.load %arg2[%c0_1, %c0_2] : memref<16x128xbf16, #tpu.memory_space<vmem>>, vector<16x128xbf16>
    %3 = arith.extf %2 : vector<16x128xbf16> to vector<16x128xf32>
    %4 = arith.mulf %1, %1 : vector<16x128xf32>
    %cst = arith.constant dense<0.000000e+00> : vector<16xf32>
    %5 = vector.multi_reduction <add>, %4, %cst [1] : vector<16x128xf32> to vector<16xf32>
    %6 = vector.shape_cast %5 : vector<16xf32> to vector<16x1xf32>
    %cst_3 = arith.constant 1.000000e-24 : f32
    %7 = vector.broadcast %cst_3 : f32 to vector<16x1xf32>
    %8 = arith.maximumf %6, %7 : vector<16x1xf32>
    %9 = math.rsqrt %8 : vector<16x1xf32>
    %10 = arith.mulf %3, %3 : vector<16x128xf32>
    %cst_4 = arith.constant dense<0.000000e+00> : vector<16xf32>
    %11 = vector.multi_reduction <add>, %10, %cst_4 [1] : vector<16x128xf32> to vector<16xf32>
    %12 = vector.shape_cast %11 : vector<16xf32> to vector<16x1xf32>
    %cst_5 = arith.constant 1.000000e-24 : f32
    %13 = vector.broadcast %cst_5 : f32 to vector<16x1xf32>
    %14 = arith.maximumf %12, %13 : vector<16x1xf32>
    %15 = math.rsqrt %14 : vector<16x1xf32>
    %16 = vector.broadcast %9 : vector<16x1xf32> to vector<16x128xf32>
    %17 = arith.mulf %1, %16 : vector<16x128xf32>
    %18 = arith.truncf %17 : vector<16x128xf32> to vector<16x128xbf16>
    %19 = vector.broadcast %15 : vector<16x1xf32> to vector<16x128xf32>
    %20 = arith.mulf %3, %19 : vector<16x128xf32>
    %21 = arith.truncf %20 : vector<16x128xf32> to vector<16x128xbf16>
    %cst_6 = arith.constant dense<0.000000e+00> : vector<16x16xf32>
    %22 = tpu.matmul %18, %21, %cst_6 {dimension_numbers = #tpu.dot_dimension_numbers<[1], [1], [0], [0], [0, 0, 1, 0], [], []>} : vector<16x128xbf16>, vector<16x128xbf16>, vector<16x16xf32> -> vector<16x16xf32>
    %23 = arith.negf %22 : vector<16x16xf32>
    %24 = math.exp %23 : vector<16x16xf32>
    %cst_7 = arith.constant 1.000000e+00 : f32
    %25 = vector.broadcast %cst_7 : f32 to vector<16x16xf32>
    %26 = arith.addf %25, %24 : vector<16x16xf32>
    %27 = arith.divf %25, %26 : vector<16x16xf32>
    %c0_8 = arith.constant 0 : index
    %c0_9 = arith.constant 0 : index
    %28 = vector.load %arg3[%c0_8, %c0_9] : memref<16x16xf32, #tpu.memory_space<vmem>>, vector<16x16xf32>
    tpu.vector_store %arg3[%c0_8, %c0_9], %27 {strides = array<i32>} : memref<16x16xf32, #tpu.memory_space<vmem>>, vector<16x16xf32>,
    return
  }
  func.func @transform_0(%arg0: i32) -> (i32, i32) {
    %c0_i32 = arith.constant 0 : i32
    %c0_i32_0 = arith.constant 0 : i32
    return %arg0, %c0_i32 : i32, i32
  }
  func.func @transform_1(%arg0: i32) -> (i32, i32) {
    %c0_i32 = arith.constant 0 : i32
    %c0_i32_0 = arith.constant 0 : i32
    %c0_i32_1 = arith.constant 0 : i32
    return %c0_i32, %c0_i32_0 : i32, i32
  }
  func.func @transform_2(%arg0: i32) -> (i32, i32) {
    %c0_i32 = arith.constant 0 : i32
    %c0_i32_0 = arith.constant 0 : i32
    return %arg0, %c0_i32 : i32, i32
  }
}

</mosaic_0001>

<bundles_post_ra>
// kernel: netg1_forward.17
= control target key start
LH: loop header
LB: loop body
LE: loop exit
PB: predicated region body
PF: predicated region fallthrough
CT: control target
= control target key end

     0   :  { %s388_s1 = inlined_call_operand.vmem [shape: bf16[128,256], index: 1, kind: input, shape index: {}]   ;;  %s389_s0 = inlined_call_operand.vmem [shape: bf16[16,128], index: 0, kind: input, shape index: {}]   ;;  %s390_s2 = inlined_call_operand.vmem [shape: bf16[1,256], index: 2, kind: input, shape index: {}]   ;;  %s391_s3 = inlined_call_operand.vmem [shape: bf16[16,256], index: 3, kind: output, shape index: {}]  }
   0x1   :  { %v229_v0 = vld [vmem:[%s388_s1 + $0x70] sm:$0xf]  ;;  %v251_v1 = vld [vmem:[%s388_s1 + $0x74] sm:$0xf0]  ;;  %v250_v2 = vld [vmem:[%s388_s1 + $0x74] sm:$0xf] }
   0x2   :  { %v230_v3 = vor.u32 %v251_v1, %v229_v0  ;;  %v231_v4 = vld [vmem:[%s388_s1 + $0x78] sm:$0xf0]  ;;  %v221_v5 = vld [vmem:[%s388_s1 + $0x60] sm:$0xf]  ;;  %v249_v6 = vld [vmem:[%s388_s1 + $0x64] sm:$0xf0] }
   0x3   :  { %v234_v7 = vor.u32 %v250_v2, %v231_v4  ;;  %v248_v8 = vld [vmem:[%s388_s1 + $0x64] sm:$0xf]  ;;  %v223_v9 = vld [vmem:[%s388_s1 + $0x68] sm:$0xf0]  ;;  %v222_v10 = vor.u32 %v249_v6, %v221_v5  ;;  %v213_v12 = vld [vmem:[%s388_s1 + $0x50] sm:$0xf] }
   0x4   :  { %127 = vmatpush.bf16.msra.mxu0 %v230_v3  ;;  %v226_v11 = vor.u32 %v248_v8, %v223_v9  ;;  %v247_v13 = vld [vmem:[%s388_s1 + $0x54] sm:$0xf0]  ;;  %v246_v14 = vld [vmem:[%s388_s1 + $0x54] sm:$0xf]  ;;  %v215_v15 = vld [vmem:[%s388_s1 + $0x58] sm:$0xf0] }
   0x5   :  { %141 = vmatpush.bf16.msra.mxu1 %v234_v7  ;;  %v214_v16 = vor.u32 %v247_v13, %v213_v12  ;;  %v218_v17 = vor.u32 %v246_v14, %v215_v15  ;;  %v205_v18 = vld [vmem:[%s388_s1 + $0x40] sm:$0xf]  ;;  %v245_v19 = vld [vmem:[%s388_s1 + $0x44] sm:$0xf0]  ;;  %v244_v20 = vld [vmem:[%s388_s1 + $0x44] sm:$0xf] }
   0x6   :  { %v207_v21 = vld [vmem:[%s388_s1 + $0x48] sm:$0xf0]  ;;  %v206_v22 = vor.u32 %v245_v19, %v205_v18  ;;  %v197_v24 = vld [vmem:[%s388_s1 + $0x30] sm:$0xf]  ;;  %v243_v25 = vld [vmem:[%s388_s1 + $0x34] sm:$0xf0] }
   0x7   :  { %v210_v23 = vor.u32 %v244_v20, %v207_v21  ;;  %v242_v26 = vld [vmem:[%s388_s1 + $0x34] sm:$0xf]  ;;  %v199_v27 = vld [vmem:[%s388_s1 + $0x38] sm:$0xf0]  ;;  %v198_v28 = vor.u32 %v243_v25, %v197_v24  ;;  %v189_v30 = vld [vmem:[%s388_s1 + $0x20] sm:$0xf] }
   0x8   :  { %128 = vmatpush.bf16.msra.mxu0 %v222_v10  ;;  %v202_v29 = vor.u32 %v242_v26, %v199_v27  ;;  %v241_v31 = vld [vmem:[%s388_s1 + $0x24] sm:$0xf0]  ;;  %v240_v32 = vld [vmem:[%s388_s1 + $0x24] sm:$0xf]  ;;  %v191_v33 = vld [vmem:[%s388_s1 + $0x28] sm:$0xf0] }
   0x9   :  { %142 = vmatpush.bf16.msra.mxu1 %v226_v11  ;;  %v190_v34 = vor.u32 %v241_v31, %v189_v30  ;;  %v194_v35 = vor.u32 %v240_v32, %v191_v33  ;;  %v181_v36 = vld [vmem:[%s388_s1 + $0x10] sm:$0xf]  ;;  %v239_v37 = vld [vmem:[%s388_s1 + $0x14] sm:$0xf0]  ;;  %v238_v38 = vld [vmem:[%s388_s1 + $0x14] sm:$0xf] }
   0xa   :  { %v183_v39 = vld [vmem:[%s388_s1 + $0x18] sm:$0xf0]  ;;  %v182_v40 = vor.u32 %v239_v37, %v181_v36  ;;  %v173_v42 = vld [vmem:[%s388_s1] sm:$0xf]  ;;  %v237_v43 = vld [vmem:[%s388_s1 + $0x4] sm:$0xf0] }
   0xb   :  { %v186_v41 = vor.u32 %v238_v38, %v183_v39  ;;  %v236_v44 = vld [vmem:[%s388_s1 + $0x4] sm:$0xf]  ;;  %v175_v45 = vld [vmem:[%s388_s1 + $0x8] sm:$0xf0]  ;;  %v174_v46 = vor.u32 %v237_v43, %v173_v42  ;;  %v32_v49 = vld [vmem:[%s390_s2] sm:$0x3] }
   0xc   :  { %129 = vmatpush.bf16.msra.mxu0 %v214_v16  ;;  %v178_v47 = vor.u32 %v236_v44, %v175_v45  ;;  %v235_v48 = vld [vmem:[%s389_s0] sm:$0xff]  ;;  %v33_v50 = vunpack.c.l.bf16 %v32_v49 }
   0xd   :  { %143 = vmatpush.bf16.msra.mxu1 %v218_v17 }
   0xe   :  { %v35_v51 = vperm.slane %v33_v50, 0  ;;  %v36_v52 = vperm.slane %v33_v50, 2 }
  0x10   :  { %130 = vmatpush.bf16.msra.mxu0 %v206_v22  ;;  %v39_v53 = vperm.slane %v35_v51, 0  ;;  %v40_v54 = vperm.slane %v36_v52, 0 }
  0x11   :  { %144 = vmatpush.bf16.msra.mxu1 %v210_v23 }
  0x14   :  { %131 = vmatpush.bf16.msra.mxu0 %v198_v28 }
  0x15   :  { %145 = vmatpush.bf16.msra.mxu1 %v202_v29 }
  0x18   :  { %132 = vmatpush.bf16.msra.mxu0 %v190_v34 }
  0x19   :  { %146 = vmatpush.bf16.msra.mxu1 %v194_v35 }
  0x1c   :  { %133 = vmatpush.bf16.msra.mxu0 %v182_v40 }
  0x1d   :  { %147 = vmatpush.bf16.msra.mxu1 %v186_v41 }
  0x20   :  { %134 = vmatpush.bf16.msra.mxu0 %v174_v46 }
  0x21   :  { %148 = vmatpush.bf16.msra.mxu1 %v178_v47 }
  0x23   :  { %135 = vmatmul.bf16.vlgmr.msra.gmra.mxu0 %v235_v48 }
  0x24   :  { %149 = vmatmul.bf16.vlgmr.msra.gmra.mxu1 %v235_v48 }
  0xa0   :  { %v136_v55 = vpop.f32.mrf.mxu0 }
  0xa1   :  { %v137_v56 = vadd.f32 %v136_v55, %v39_v53  ;;  %v150_v57 = vpop.f32.mrf.mxu1 }
  0xa2   :  { %v151_v58 = vadd.f32 %v150_v57, %v40_v54 }
  0xa3   :  { %252 = vtanh.f32 %v137_v56 }
  0xa4   :  { %254 = vtanh.f32 %v151_v58 }
  0xa8   :  { %v138_v59 = vpop.f32.mrf.mxu0 }
  0xa9   :  { %v253_v60 = vpop.eup %252  ;;  %v139_v61 = vadd.f32 %v138_v59, %v39_v53  ;;  %v152_v62 = vpop.f32.mrf.mxu1 }
  0xaa   :  { %v255_v63 = vpop.eup %254  ;;  %v153_v0 = vadd.f32 %v152_v62, %v40_v54 }
  0xab   :  { %v159_v1 = vpack.c.bf16 %v255_v63, %v253_v60  ;;  %256 = vtanh.f32 %v139_v61 }
  0xac   :  { %258 = vtanh.f32 %v153_v0 }
  0xad   :  { %161 = vst [vmem:[%s391_s3] sm:$0xff] %v159_v1 }
  0xb1   :  { %v257_v2 = vpop.eup %256 }
  0xb2   :  { %v259_v3 = vpop.eup %258 }
  0xb3   :  { %v160_v4 = vpack.c.bf16 %v259_v3, %v257_v2 }
  0xb5   :  { %162 = vst [vmem:[%s391_s3 + $0x8] sm:$0xff] %v160_v4 }

// kernel: netg1_forward.18
= control target key start
LH: loop header
LB: loop body
LE: loop exit
PB: predicated region body
PF: predicated region fallthrough
CT: control target
= control target key end

     0   :  { %vm43_vm0 = vcmask 130048   ;;  %s151_s1 = inlined_call_operand.vmem [shape: bf16[16,256], index: 1, kind: input, shape index: {}]   ;;  %s152_s0 = inlined_call_operand.vmem [shape: bf16[16,16], index: 0, kind: input, shape index: {}]   ;;  %s153_s2 = inlined_call_operand.vmem [shape: bf16[16,256], index: 2, kind: output, shape index: {}]  }
   0x1   :  { %v104_v0 = vld [vmem:[%s151_s1] sm:$0xf]  ;;  %v114_v1 = vld [vmem:[%s151_s1 + $0x4] sm:$0xf0]  ;;  %v113_v2 = vld [vmem:[%s151_s1 + $0x4] sm:$0xf] }
   0x2   :  { %v105_v3 = vor.u32 %v114_v1, %v104_v0  ;;  %v106_v4 = vld [vmem:[%s151_s1 + $0x8] sm:$0xf0]  ;;  %v112_v6 = vld [vmem:[%s152_s0] sm:$0xff] }
   0x3   :  { %v109_v5 = vor.u32 %v113_v2, %v106_v4 }
   0x4   :  { %54 = vmatpush.bf16.msra.mxu0 %v105_v3 }
   0x5   :  { %68 = vmatpush.bf16.msra.mxu1 %v109_v5 }
   0x7   :  { %110 = vmatmul.msk.bf16.vlgmr.msra.gmra.mxu0 %vm43_vm0, %v112_v6 }
   0x8   :  { %111 = vmatmul.msk.bf16.vlgmr.msra.gmra.mxu1 %vm43_vm0, %v112_v6 }
  0x84   :  { %v56_v7 = vpop.f32.mrf.mxu0 }
  0x85   :  { %v70_v8 = vpop.f32.mrf.mxu1 }
  0x86   :  { %v90_v9 = vpack.c.bf16 %v70_v8, %v56_v7 }
  0x88   :  { %92 = vst [vmem:[%s153_s2] sm:$0xff] %v90_v9 }
  0x8c   :  { %v58_v10 = vpop.f32.mrf.mxu0 }
  0x8d   :  { %v72_v11 = vpop.f32.mrf.mxu1 }
  0x8e   :  { %v91_v12 = vpack.c.bf16 %v72_v11, %v58_v10 }
  0x90   :  { %93 = vst [vmem:[%s153_s2 + $0x8] sm:$0xff] %v91_v12 }

// kernel: netg1_forward.16
= control target key start
LH: loop header
LB: loop body
LE: loop exit
PB: predicated region body
PF: predicated region fallthrough
CT: control target
= control target key end

     0   :  { %vm35_vm0 = vcmask 130048   ;;  %s110_s1 = inlined_call_operand.vmem [shape: bf16[16,128], index: 1, kind: input, shape index: {}]   ;;  %s111_s0 = inlined_call_operand.vmem [shape: bf16[16,16], index: 0, kind: input, shape index: {}]   ;;  %s112_s2 = inlined_call_operand.vmem [shape: bf16[16,128], index: 2, kind: output, shape index: {}]  }
   0x1   :  { %v80_v0 = vld [vmem:[%s110_s1] sm:$0xff] }
   0x2   :  { %v79_v1 = vld [vmem:[%s111_s0] sm:$0xff]  ;;  %46 = vmatpush.bf16.msra.mxu0 %v80_v0 }
   0x5   :  { %78 = vmatmul.msk.bf16.vlgmr.msra.gmra.mxu0 %vm35_vm0, %v79_v1 }
  0x82   :  { %v48_v2 = vpop.f32.mrf.mxu0 }
  0x8a   :  { %v50_v3 = vpop.f32.mrf.mxu0 }
  0x8b   :  { %v84_v4 = vpack.c.bf16 %v50_v3, %v48_v2 }
  0x8d   :  { %85 = vst [vmem:[%s112_s2] sm:$0xff] %v84_v4  }

// kernel: netg1_forward.15
= control target key start
LH: loop header
LB: loop body
LE: loop exit
PB: predicated region body
PF: predicated region fallthrough
CT: control target
= control target key end

     0   :  { %s220_s1 = inlined_call_operand.vmem [shape: bf16[128,128], index: 1, kind: input, shape index: {}]   ;;  %s221_s0 = inlined_call_operand.vmem [shape: bf16[16,128], index: 0, kind: input, shape index: {}]   ;;  %s222_s2 = inlined_call_operand.vmem [shape: bf16[1,128], index: 2, kind: input, shape index: {}]   ;;  %s223_s3 = inlined_call_operand.vmem [shape: bf16[16,128], index: 3, kind: output, shape index: {}]  }
   0x1   :  { %v157_v0 = vld [vmem:[%s220_s1 + $0x38] sm:$0xff]  ;;  %v156_v1 = vld [vmem:[%s220_s1 + $0x30] sm:$0xff]  ;;  %v155_v2 = vld [vmem:[%s220_s1 + $0x28] sm:$0xff] }
   0x2   :  { %89 = vmatpush.bf16.msra.mxu0 %v157_v0  ;;  %v154_v3 = vld [vmem:[%s220_s1 + $0x20] sm:$0xff]  ;;  %v153_v4 = vld [vmem:[%s220_s1 + $0x18] sm:$0xff]  ;;  %v152_v5 = vld [vmem:[%s220_s1 + $0x10] sm:$0xff] }
   0x3   :  { %v151_v6 = vld [vmem:[%s220_s1 + $0x8] sm:$0xff]  ;;  %v150_v7 = vld [vmem:[%s220_s1] sm:$0xff] }
   0x4   :  { %v149_v8 = vld [vmem:[%s221_s0] sm:$0xff] }
   0x5   :  { %v32_v9 = vld [vmem:[%s222_s2] sm:$0x1] }
   0x6   :  { %90 = vmatpush.bf16.msra.mxu0 %v156_v1  ;;  %v33_v10 = vunpack.c.l.bf16 %v32_v9 }
   0x8   :  { %v34_v12 = vperm.slane %v33_v10, 0 }
   0xa   :  { %91 = vmatpush.bf16.msra.mxu0 %v155_v2 }
   0xe   :  { %92 = vmatpush.bf16.msra.mxu0 %v154_v3 }
  0x12   :  { %93 = vmatpush.bf16.msra.mxu0 %v153_v4 }
  0x16   :  { %94 = vmatpush.bf16.msra.mxu0 %v152_v5 }
  0x1a   :  { %95 = vmatpush.bf16.msra.mxu0 %v151_v6 }
  0x1e   :  { %96 = vmatpush.bf16.msra.mxu0 %v150_v7 }
  0x21   :  { %97 = vmatmul.bf16.vlgmr.msra.gmra.mxu0 %v149_v8 }
  0x9e   :  { %v98_v11 = vpop.f32.mrf.mxu0 }
  0x9f   :  { %v99_v13 = vadd.f32 %v98_v11, %v34_v12 }
  0xa1   :  { %163 = vtanh.f32 %v99_v13 }
  0xa6   :  { %v100_v14 = vpop.f32.mrf.mxu0 }
  0xa7   :  { %v101_v15 = vadd.f32 %v100_v14, %v34_v12  ;;  %v164_v16 = vpop.eup %163 }
  0xa9   :  { %165 = vtanh.f32 %v101_v15 }
  0xaf   :  { %v166_v17 = vpop.eup %165 }
  0xb0   :  { %v161_v18 = vpack.c.bf16 %v166_v17, %v164_v16 }
  0xb2   :  { %162 = vst [vmem:[%s223_s3] sm:$0xff] %v161_v18  }

// kernel: netg1_forward.19
= control target key start
LH: loop header
LB: loop body
LE: loop exit
PB: predicated region body
PF: predicated region fallthrough
CT: control target
= control target key end

     0   :  { %s374_s1 = inlined_call_operand.vmem [shape: bf16[256,128], index: 1, kind: input, shape index: {}]   ;;  %s375_s0 = inlined_call_operand.vmem [shape: bf16[16,256], index: 0, kind: input, shape index: {}]   ;;  %s376_s2 = inlined_call_operand.vmem [shape: bf16[1,128], index: 2, kind: input, shape index: {}]   ;;  %s377_s3 = inlined_call_operand.vmem [shape: bf16[16,128], index: 3, kind: output, shape index: {}]  }
   0x1   :  { %v274_v0 = vld [vmem:[%s374_s1 + $0x38] sm:$0xff]  ;;  %v273_v2 = vld [vmem:[%s374_s1 + $0x30] sm:$0xff]  ;;  %v272_v4 = vld [vmem:[%s374_s1 + $0x28] sm:$0xff] }
   0x2   :  { %v282_v1 = vld [vmem:[%s374_s1 + $0x78] sm:$0xff]  ;;  %157 = vmatpush.bf16.msra.mxu0 %v274_v0  ;;  %v281_v3 = vld [vmem:[%s374_s1 + $0x70] sm:$0xff]  ;;  %v280_v5 = vld [vmem:[%s374_s1 + $0x68] sm:$0xff] }
   0x3   :  { %171 = vmatpush.bf16.msra.mxu1 %v282_v1  ;;  %v271_v6 = vld [vmem:[%s374_s1 + $0x20] sm:$0xff]  ;;  %v270_v8 = vld [vmem:[%s374_s1 + $0x18] sm:$0xff]  ;;  %v269_v10 = vld [vmem:[%s374_s1 + $0x10] sm:$0xff] }
   0x4   :  { %v279_v7 = vld [vmem:[%s374_s1 + $0x60] sm:$0xff]  ;;  %v278_v9 = vld [vmem:[%s374_s1 + $0x58] sm:$0xff]  ;;  %v277_v11 = vld [vmem:[%s374_s1 + $0x50] sm:$0xff] }
   0x5   :  { %v268_v12 = vld [vmem:[%s374_s1 + $0x8] sm:$0xff]  ;;  %v267_v14 = vld [vmem:[%s374_s1] sm:$0xff] }
   0x6   :  { %158 = vmatpush.bf16.msra.mxu0 %v273_v2  ;;  %v276_v13 = vld [vmem:[%s374_s1 + $0x48] sm:$0xff]  ;;  %v275_v15 = vld [vmem:[%s374_s1 + $0x40] sm:$0xff] }
   0x7   :  { %172 = vmatpush.bf16.msra.mxu1 %v281_v3  ;;  %v195_v16 = vld [vmem:[%s375_s0] sm:$0xf]  ;;  %v266_v17 = vld [vmem:[%s375_s0 + $0x4] sm:$0xf0]  ;;  %v265_v18 = vld [vmem:[%s375_s0 + $0x4] sm:$0xf] }
   0x8   :  { %v197_v19 = vld [vmem:[%s375_s0 + $0x8] sm:$0xf0]  ;;  %v196_v20 = vor.u32 %v266_v17, %v195_v16  ;;  %v48_v22 = vld [vmem:[%s376_s2] sm:$0x1] }
   0x9   :  { %v200_v21 = vor.u32 %v265_v18, %v197_v19  ;;  %v49_v23 = vunpack.c.l.bf16 %v48_v22 }
   0xa   :  { %159 = vmatpush.bf16.msra.mxu0 %v272_v4 }
   0xb   :  { %173 = vmatpush.bf16.msra.mxu1 %v280_v5  ;;  %v50_v26 = vperm.slane %v49_v23, 0 }
   0xe   :  { %160 = vmatpush.bf16.msra.mxu0 %v271_v6 }
   0xf   :  { %174 = vmatpush.bf16.msra.mxu1 %v279_v7 }
  0x12   :  { %161 = vmatpush.bf16.msra.mxu0 %v270_v8 }
  0x13   :  { %175 = vmatpush.bf16.msra.mxu1 %v278_v9 }
  0x16   :  { %162 = vmatpush.bf16.msra.mxu0 %v269_v10 }
  0x17   :  { %176 = vmatpush.bf16.msra.mxu1 %v277_v11 }
  0x1a   :  { %163 = vmatpush.bf16.msra.mxu0 %v268_v12 }
  0x1b   :  { %177 = vmatpush.bf16.msra.mxu1 %v276_v13 }
  0x1e   :  { %164 = vmatpush.bf16.msra.mxu0 %v267_v14 }
  0x1f   :  { %178 = vmatpush.bf16.msra.mxu1 %v275_v15 }
  0x21   :  { %165 = vmatmul.bf16.vlgmr.msra.gmra.mxu0 %v196_v20 }
  0x22   :  { %179 = vmatmul.bf16.vlgmr.msra.gmra.mxu1 %v200_v21 }
  0x9e   :  { %v166_v24 = vpop.f32.mrf.mxu0 }
  0x9f   :  { %v180_v25 = vpop.f32.mrf.mxu1  ;;  %v167_v27 = vadd.f32 %v166_v24, %v50_v26 }
  0xa1   :  { %v181_v31 = vadd.f32 %v180_v25, %v167_v27 }
  0xa6   :  { %v168_v28 = vpop.f32.mrf.mxu0 }
  0xa7   :  { %v169_v29 = vadd.f32 %v168_v28, %v50_v26  ;;  %v182_v30 = vpop.f32.mrf.mxu1 }
  0xa9   :  { %v183_v32 = vadd.f32 %v182_v30, %v169_v29 }
  0xab   :  { %v286_v33 = vpack.c.bf16 %v183_v32, %v181_v31 }
  0xad   :  { %287 = vst [vmem:[%s377_s3] sm:$0xff] %v286_v33  }

// kernel: netg1_forward.21
= control target key start
LH: loop header
LB: loop body
LE: loop exit
PB: predicated region body
PF: predicated region fallthrough
CT: control target
= control target key end

     0   :  { %s216_s1 = inlined_call_operand.vmem [shape: bf16[128,128], index: 1, kind: input, shape index: {}]   ;;  %s217_s0 = inlined_call_operand.vmem [shape: bf16[16,128], index: 0, kind: input, shape index: {}]   ;;  %s218_s2 = inlined_call_operand.vmem [shape: bf16[1,128], index: 2, kind: input, shape index: {}]   ;;  %s219_s3 = inlined_call_operand.vmem [shape: bf16[16,128], index: 3, kind: output, shape index: {}]  }
   0x1   :  { %v157_v0 = vld [vmem:[%s216_s1 + $0x38] sm:$0xff]  ;;  %v156_v1 = vld [vmem:[%s216_s1 + $0x30] sm:$0xff]  ;;  %v155_v2 = vld [vmem:[%s216_s1 + $0x28] sm:$0xff] }
   0x2   :  { %89 = vmatpush.bf16.msra.mxu0 %v157_v0  ;;  %v154_v3 = vld [vmem:[%s216_s1 + $0x20] sm:$0xff]  ;;  %v153_v4 = vld [vmem:[%s216_s1 + $0x18] sm:$0xff]  ;;  %v152_v5 = vld [vmem:[%s216_s1 + $0x10] sm:$0xff] }
   0x3   :  { %v151_v6 = vld [vmem:[%s216_s1 + $0x8] sm:$0xff]  ;;  %v150_v7 = vld [vmem:[%s216_s1] sm:$0xff] }
   0x4   :  { %v149_v8 = vld [vmem:[%s217_s0] sm:$0xff] }
   0x5   :  { %v32_v9 = vld [vmem:[%s218_s2] sm:$0x1] }
   0x6   :  { %90 = vmatpush.bf16.msra.mxu0 %v156_v1  ;;  %v33_v10 = vunpack.c.l.bf16 %v32_v9 }
   0x8   :  { %v34_v12 = vperm.slane %v33_v10, 0 }
   0xa   :  { %91 = vmatpush.bf16.msra.mxu0 %v155_v2 }
   0xe   :  { %92 = vmatpush.bf16.msra.mxu0 %v154_v3 }
  0x12   :  { %93 = vmatpush.bf16.msra.mxu0 %v153_v4 }
  0x16   :  { %94 = vmatpush.bf16.msra.mxu0 %v152_v5 }
  0x1a   :  { %95 = vmatpush.bf16.msra.mxu0 %v151_v6 }
  0x1e   :  { %96 = vmatpush.bf16.msra.mxu0 %v150_v7 }
  0x21   :  { %97 = vmatmul.bf16.vlgmr.msra.gmra.mxu0 %v149_v8 }
  0x9e   :  { %v98_v11 = vpop.f32.mrf.mxu0 }
  0x9f   :  { %v99_v13 = vadd.f32 %v98_v11, %v34_v12 }
  0xa1   :  { %v103_v16 = vmax.f32 %v99_v13, 0.0 }
  0xa6   :  { %v100_v14 = vpop.f32.mrf.mxu0 }
  0xa7   :  { %v101_v15 = vadd.f32 %v100_v14, %v34_v12 }
  0xa9   :  { %v104_v17 = vmax.f32 %v101_v15, 0.0 }
  0xab   :  { %v161_v18 = vpack.c.bf16 %v104_v17, %v103_v16 }
  0xad   :  { %162 = vst [vmem:[%s219_s3] sm:$0xff] %v161_v18  }

// kernel: netg1_forward.22
= control target key start
LH: loop header
LB: loop body
LE: loop exit
PB: predicated region body
PF: predicated region fallthrough
CT: control target
= control target key end

     0   :  { %s214_s1 = inlined_call_operand.vmem [shape: bf16[128,128], index: 1, kind: input, shape index: {}]   ;;  %s215_s0 = inlined_call_operand.vmem [shape: bf16[16,128], index: 0, kind: input, shape index: {}]   ;;  %s216_s2 = inlined_call_operand.vmem [shape: bf16[1,128], index: 2, kind: input, shape index: {}]   ;;  %s217_s3 = inlined_call_operand.vmem [shape: bf16[16,128], index: 3, kind: output, shape index: {}]  }
   0x1   :  { %v155_v0 = vld [vmem:[%s214_s1 + $0x38] sm:$0xff]  ;;  %v154_v1 = vld [vmem:[%s214_s1 + $0x30] sm:$0xff]  ;;  %v153_v2 = vld [vmem:[%s214_s1 + $0x28] sm:$0xff] }
   0x2   :  { %89 = vmatpush.bf16.msra.mxu0 %v155_v0  ;;  %v152_v3 = vld [vmem:[%s214_s1 + $0x20] sm:$0xff]  ;;  %v151_v4 = vld [vmem:[%s214_s1 + $0x18] sm:$0xff]  ;;  %v150_v5 = vld [vmem:[%s214_s1 + $0x10] sm:$0xff] }
   0x3   :  { %v149_v6 = vld [vmem:[%s214_s1 + $0x8] sm:$0xff]  ;;  %v148_v7 = vld [vmem:[%s214_s1] sm:$0xff] }
   0x4   :  { %v147_v8 = vld [vmem:[%s215_s0] sm:$0xff] }
   0x5   :  { %v32_v9 = vld [vmem:[%s216_s2] sm:$0x1] }
   0x6   :  { %90 = vmatpush.bf16.msra.mxu0 %v154_v1  ;;  %v33_v11 = vunpack.c.l.bf16 %v32_v9 }
   0x8   :  { %v34_v12 = vperm.slane %v33_v11, 0 }
   0xa   :  { %91 = vmatpush.bf16.msra.mxu0 %v153_v2 }
   0xe   :  { %92 = vmatpush.bf16.msra.mxu0 %v152_v3 }
  0x12   :  { %93 = vmatpush.bf16.msra.mxu0 %v151_v4 }
  0x16   :  { %94 = vmatpush.bf16.msra.mxu0 %v150_v5 }
  0x1a   :  { %95 = vmatpush.bf16.msra.mxu0 %v149_v6 }
  0x1e   :  { %96 = vmatpush.bf16.msra.mxu0 %v148_v7 }
  0x21   :  { %97 = vmatmul.bf16.vlgmr.msra.gmra.mxu0 %v147_v8 }
  0x9e   :  { %v98_v10 = vpop.f32.mrf.mxu0 }
  0x9f   :  { %v99_v14 = vadd.f32 %v98_v10, %v34_v12 }
  0xa6   :  { %v100_v13 = vpop.f32.mrf.mxu0 }
  0xa7   :  { %v101_v15 = vadd.f32 %v100_v13, %v34_v12 }
  0xa9   :  { %v159_v16 = vpack.c.bf16 %v101_v15, %v99_v14 }
  0xab   :  { %160 = vst [vmem:[%s217_s3] sm:$0xff] %v159_v16  }

// kernel: netg1_forward.26
= control target key start
LH: loop header
LB: loop body
LE: loop exit
PB: predicated region body
PF: predicated region fallthrough
CT: control target
= control target key end

     0   :  { %s380_s1 = inlined_call_operand.vmem [shape: bf16[256,128], index: 1, kind: input, shape index: {}]   ;;  %s381_s0 = inlined_call_operand.vmem [shape: bf16[16,256], index: 0, kind: input, shape index: {}]   ;;  %s382_s2 = inlined_call_operand.vmem [shape: bf16[1,128], index: 2, kind: input, shape index: {}]   ;;  %s383_s3 = inlined_call_operand.vmem [shape: bf16[16,128], index: 3, kind: output, shape index: {}]  }
   0x1   :  { %v276_v0 = vld [vmem:[%s380_s1 + $0x38] sm:$0xff]  ;;  %v275_v2 = vld [vmem:[%s380_s1 + $0x30] sm:$0xff]  ;;  %v274_v4 = vld [vmem:[%s380_s1 + $0x28] sm:$0xff] }
   0x2   :  { %v284_v1 = vld [vmem:[%s380_s1 + $0x78] sm:$0xff]  ;;  %157 = vmatpush.bf16.msra.mxu0 %v276_v0  ;;  %v283_v3 = vld [vmem:[%s380_s1 + $0x70] sm:$0xff]  ;;  %v282_v5 = vld [vmem:[%s380_s1 + $0x68] sm:$0xff] }
   0x3   :  { %171 = vmatpush.bf16.msra.mxu1 %v284_v1  ;;  %v273_v6 = vld [vmem:[%s380_s1 + $0x20] sm:$0xff]  ;;  %v272_v8 = vld [vmem:[%s380_s1 + $0x18] sm:$0xff]  ;;  %v271_v10 = vld [vmem:[%s380_s1 + $0x10] sm:$0xff] }
   0x4   :  { %v281_v7 = vld [vmem:[%s380_s1 + $0x60] sm:$0xff]  ;;  %v280_v9 = vld [vmem:[%s380_s1 + $0x58] sm:$0xff]  ;;  %v279_v11 = vld [vmem:[%s380_s1 + $0x50] sm:$0xff] }
   0x5   :  { %v270_v12 = vld [vmem:[%s380_s1 + $0x8] sm:$0xff]  ;;  %v269_v14 = vld [vmem:[%s380_s1] sm:$0xff] }
   0x6   :  { %158 = vmatpush.bf16.msra.mxu0 %v275_v2  ;;  %v278_v13 = vld [vmem:[%s380_s1 + $0x48] sm:$0xff]  ;;  %v277_v15 = vld [vmem:[%s380_s1 + $0x40] sm:$0xff] }
   0x7   :  { %172 = vmatpush.bf16.msra.mxu1 %v283_v3  ;;  %v197_v16 = vld [vmem:[%s381_s0] sm:$0xf]  ;;  %v268_v17 = vld [vmem:[%s381_s0 + $0x4] sm:$0xf0]  ;;  %v267_v18 = vld [vmem:[%s381_s0 + $0x4] sm:$0xf] }
   0x8   :  { %v199_v19 = vld [vmem:[%s381_s0 + $0x8] sm:$0xf0]  ;;  %v198_v20 = vor.u32 %v268_v17, %v197_v16  ;;  %v48_v22 = vld [vmem:[%s382_s2] sm:$0x1] }
   0x9   :  { %v202_v21 = vor.u32 %v267_v18, %v199_v19  ;;  %v49_v23 = vunpack.c.l.bf16 %v48_v22 }
   0xa   :  { %159 = vmatpush.bf16.msra.mxu0 %v274_v4 }
   0xb   :  { %173 = vmatpush.bf16.msra.mxu1 %v282_v5  ;;  %v50_v24 = vperm.slane %v49_v23, 0 }
   0xe   :  { %160 = vmatpush.bf16.msra.mxu0 %v273_v6 }
   0xf   :  { %174 = vmatpush.bf16.msra.mxu1 %v281_v7 }
  0x12   :  { %161 = vmatpush.bf16.msra.mxu0 %v272_v8 }
  0x13   :  { %175 = vmatpush.bf16.msra.mxu1 %v280_v9 }
  0x16   :  { %162 = vmatpush.bf16.msra.mxu0 %v271_v10 }
  0x17   :  { %176 = vmatpush.bf16.msra.mxu1 %v279_v11 }
  0x1a   :  { %163 = vmatpush.bf16.msra.mxu0 %v270_v12 }
  0x1b   :  { %177 = vmatpush.bf16.msra.mxu1 %v278_v13 }
  0x1e   :  { %164 = vmatpush.bf16.msra.mxu0 %v269_v14 }
  0x1f   :  { %178 = vmatpush.bf16.msra.mxu1 %v277_v15 }
  0x21   :  { %165 = vmatmul.bf16.vlgmr.msra.gmra.mxu0 %v198_v20 }
  0x22   :  { %179 = vmatmul.bf16.vlgmr.msra.gmra.mxu1 %v202_v21 }
  0x9e   :  { %v166_v25 = vpop.f32.mrf.mxu0 }
  0x9f   :  { %v180_v26 = vpop.f32.mrf.mxu1  ;;  %v167_v27 = vadd.f32 %v166_v25, %v50_v24 }
  0xa1   :  { %v181_v28 = vadd.f32 %v180_v26, %v167_v27 }
  0xa3   :  { %290 = vtanh.f32 %v181_v28 }
  0xa6   :  { %v168_v29 = vpop.f32.mrf.mxu0 }
  0xa7   :  { %v169_v30 = vadd.f32 %v168_v29, %v50_v24  ;;  %v182_v31 = vpop.f32.mrf.mxu1 }
  0xa9   :  { %v183_v32 = vadd.f32 %v182_v31, %v169_v30  ;;  %v291_v33 = vpop.eup %290 }
  0xab   :  { %292 = vtanh.f32 %v183_v32 }
  0xb1   :  { %v293_v34 = vpop.eup %292 }
  0xb2   :  { %v288_v35 = vpack.c.bf16 %v293_v34, %v291_v33 }
  0xb4   :  { %289 = vst [vmem:[%s383_s3] sm:$0xff] %v288_v35  }

// kernel: netg1_forward.29
= control target key start
LH: loop header
LB: loop body
LE: loop exit
PB: predicated region body
PF: predicated region fallthrough
CT: control target
= control target key end

     0   :  { %s150_s0 = inlined_call_operand.vmem [shape: bf16[16,16], index: 0, kind: input, shape index: {}]   ;;  %s151_s1 = inlined_call_operand.vmem [shape: bf16[16,128], index: 1, kind: input, shape index: {}]   ;;  %s152_s2 = inlined_call_operand.hbm [shape: f32[16,128], index: 2, kind: output, shape index: {}]  }
   0x1   :  { %v93_v0 = vld [vmem:[%s151_s1] sm:$0xff] }
   0x2   :  { %7 = vsyncpa [#allocation4], 0  ;;  %v92_v1 = vld [vmem:[%s150_s0] sm:$0xff]  ;;  %47 = vmatpush.bf16.msra.mxu0 %v93_v0  ;;  %vm36_vm0 = vcmask 130048   ;;  %s123_s13 = smov [#allocation3]   ;;  %s71_s17 = sshll.u32 %s152_s2, 4  ;;  %s72_s17 = int_to_ptr.hbm [resolvable:$true] %s71_s17 }
   0x3   :  { %s69_s14 = sshll.u32 %s123_s13, 4  ;;  %s124_s1 = smov 128   ;;  %s70_s14 = int_to_ptr.vmem [resolvable:$true] %s69_s14 }
   0x4   :  { %s125_s18 = smov 8  }
   0x5   :  { %91 = vmatmul.msk.bf16.vlgmr.msra.gmra.mxu0 %vm36_vm0, %v92_v1 }
  0x82   :  { %v49_v2 = vpop.f32.mrf.mxu0 }
  0x83   :  { %63 = vst [vmem:[#allocation3] sm:$0xff] %v49_v2 }
  0x8a   :  { %v51_v3 = vpop.f32.mrf.mxu0 }
  0x8b   :  { %64 = vst [vmem:[#allocation3 + $0x8] sm:$0xff] %v51_v3 }
  0x8c   :  { %77 = dma.vmem_to_hbm [thread:$0]  %s70_s14, 256, %s72_s17, [#allocation4], %s124_s1, %s124_s1, %s125_s18  }
  0x8d   :  { %121 = dma.done.wait [#allocation4], 256  }
  0x8e   :  { %122 = vsyncadd [#allocation4], 4294967040 }
  0x8f   :  { %82 = vsyncpa [#allocation4], 1 }

// kernel: netg1_forward.23
= control target key start
LH: loop header
LB: loop body
LE: loop exit
PB: predicated region body
PF: predicated region fallthrough
CT: control target
= control target key end

     0   :  { %s245_s0 = inlined_call_operand.vmem [shape: bf16[16,128], index: 0, kind: input, shape index: {}, may-alias: {0,1}]   ;;  %s246_s1 = inlined_call_operand.vmem [shape: bf16[16,128], index: 1, kind: input, shape index: {}, may-alias: {0,1}]   ;;  %s247_s2 = inlined_call_operand.hbm [shape: f32[16,16], index: 2, kind: output, shape index: {}]  }
   0x1   :  { %v163_v0 = vld [vmem:[%s246_s1] sm:$0xff]  }
   0x2   :  { %v159_v1 = vld [vmem:[%s245_s0] sm:$0xff]  }
   0x3   :  { %7 = vsyncpa [#allocation3], 0  ;;  %v164_v2 = vunpack.c.l.bf16 %v163_v0  ;;  %v235_v3 = vunpack.c.l.bf16 %v159_v1  ;;  %v165_v6 = vunpack.c.h.bf16 %v163_v0  ;;  %v161_v7 = vunpack.c.h.bf16 %v159_v1  ;;  %s211_s0 = smov [#allocation2]   ;;  %s144_s15 = sshll.u32 %s247_s2, 4  ;;  %s145_s15 = int_to_ptr.hbm [resolvable:$true] %s144_s15 }
   0x4   :  { %vm135_vm15 = vcmask 130048   ;;  %s142_s1 = sshll.u32 %s211_s0, 4  ;;  %s212_s16 = smov 128   ;;  %s143_s1 = int_to_ptr.vmem [resolvable:$true] %s142_s1 }
   0x5   :  { %v49_v4 = vmul.f32 %v164_v2, %v164_v2  ;;  %v21_v5 = vmul.f32 %v235_v3, %v235_v3  ;;  %v50_v8 = vmul.f32 %v165_v6, %v165_v6  ;;  %v22_v9 = vmul.f32 %v161_v7, %v161_v7  ;;  %s213_s17 = smov 8  }
   0x7   :  { %51 = vadd.xlane.f32.xlu0 %v49_v4  ;;  %23 = vadd.xlane.f32.xlu1 %v21_v5 }
   0xf   :  { %53 = vadd.xlane.f32.xlu0 %v50_v8  ;;  %25 = vadd.xlane.f32.xlu1 %v22_v9 }
  0x7a   :  { %v52_v10 = vpop.xlane.xlu0 %51  ;;  %v24_v11 = vpop.xlane.xlu1 %23 }
  0x7b   :  { %v55_v12 = vmax.f32 %v52_v10, 1e-24  ;;  %v27_v13 = vmax.f32 %v24_v11, 1e-24 }
  0x7d   :  { %169 = vrsqrt.f32 %v55_v12  ;;  %vm63_vm1 = vweird.f32 %v55_v12  ;;  %vm35_vm8 = vweird.f32 %v27_v13 }
  0x7e   :  { %171 = vrsqrt.f32 %v27_v13 }
  0x82   :  { %v54_v14 = vpop.xlane.xlu0 %53  ;;  %v26_v15 = vpop.xlane.xlu1 %25 }
  0x83   :  { %v170_v16 = vpop.eup %169  ;;  %v56_v17 = vmax.f32 %v54_v14, 1e-24  ;;  %v28_v18 = vmax.f32 %v26_v15, 1e-24 }
  0x84   :  { %v172_v19 = vpop.eup %171  ;;  %v58_v20 = vmul.f32 %v170_v16, %v55_v12  ;;  %vm64_vm0 = vweird.f32 %v170_v16 }
  0x85   :  { %173 = vrsqrt.f32 %v56_v17  ;;  %v30_v22 = vmul.f32 %v172_v19, %v27_v13  ;;  %vm65_vm3 = vmor %vm63_vm1, %vm64_vm0  ;;  %vm73_vm4 = vweird.f32 %v56_v17  ;;  %vm45_vm5 = vweird.f32 %v28_v18 }
  0x86   :  { %v59_v21 = vmul.f32 %v170_v16, %v58_v20  ;;  %175 = vrsqrt.f32 %v28_v18  ;;  %vm36_vm9 = vweird.f32 %v172_v19 }
  0x87   :  { %v31_v25 = vmul.f32 %v172_v19, %v30_v22  ;;  %vm37_vm11 = vmor %vm35_vm8, %vm36_vm9 }
  0x88   :  { %v60_v23 = vmul.f32 0.5, %v59_v21 }
  0x89   :  { %v32_v31 = vmul.f32 0.5, %v31_v25 }
  0x8a   :  { %v61_v27 = vsub.f32 1.5, %v60_v23 }
  0x8b   :  { %v174_v24 = vpop.eup %173  ;;  %v33_v37 = vsub.f32 1.5, %v32_v31 }
  0x8c   :  { %v176_v26 = vpop.eup %175  ;;  %v68_v28 = vmul.f32 %v174_v24, %v56_v17  ;;  %v62_v34 = vmul.f32 %v170_v16, %v61_v27  ;;  %vm74_vm2 = vweird.f32 %v174_v24 }
  0x8d   :  { %v40_v29 = vmul.f32 %v176_v26, %v28_v18  ;;  %vm46_vm6 = vweird.f32 %v176_v26  ;;  %vm75_vm7 = vmor %vm73_vm4, %vm74_vm2  ;;  %v34_v45 = vmul.f32 %v172_v19, %v33_v37 }
  0x8e   :  { %v69_v30 = vmul.f32 %v174_v24, %v68_v28  ;;  %v66_v39 = vsel %vm65_vm3, %v170_v16, %v62_v34  ;;  %vm47_vm10 = vmor %vm45_vm5, %vm46_vm6 }
  0x8f   :  { %v41_v32 = vmul.f32 %v176_v26, %v40_v29  ;;  %v80_v43 = vmul.f32 %v164_v2, %v66_v39  ;;  %v38_v48 = vsel %vm37_vm11, %v172_v19, %v34_v45 }
  0x90   :  { %v70_v33 = vmul.f32 0.5, %v69_v30  ;;  %v77_v50 = vmul.f32 %v235_v3, %v38_v48 }
  0x91   :  { %v42_v35 = vmul.f32 0.5, %v41_v32 }
  0x92   :  { %v71_v36 = vsub.f32 1.5, %v70_v33 }
  0x93   :  { %v43_v38 = vsub.f32 1.5, %v42_v35 }
  0x94   :  { %v72_v40 = vmul.f32 %v174_v24, %v71_v36 }
  0x95   :  { %v44_v41 = vmul.f32 %v176_v26, %v43_v38 }
  0x96   :  { %v76_v42 = vsel %vm75_vm7, %v174_v24, %v72_v40 }
  0x97   :  { %v81_v44 = vmul.f32 %v165_v6, %v76_v42  ;;  %v48_v47 = vsel %vm47_vm10, %v176_v26, %v44_v41 }
  0x98   :  { %v78_v49 = vmul.f32 %v161_v7, %v48_v47 }
  0x99   :  { %v82_v46 = vpack.c.bf16 %v81_v44, %v80_v43 }
  0x9a   :  { %v79_v51 = vpack.c.bf16 %v78_v49, %v77_v50 }
  0x9b   :  { %90 = vmatpush.bf16.xpose.msra.mxu0 %v82_v46 }
  0xa2   :  { %91 = vmatmul.bf16.vlgmr.msra.gmra.mxu0 %v79_v51 }
 0x11f   :  { %v92_v52 = vpop.f32.mrf.mxu0 }
 0x120   :  { %v156_v53 = vmul.f32 -1.442695, %v92_v52 }
 0x122   :  { %177 = vpow2.f32 %v156_v53 }
 0x127   :  { %v94_v54 = vpop.f32.mrf.mxu0 }
 0x128   :  { %v178_v55 = vpop.eup %177  ;;  %v157_v56 = vmul.f32 -1.442695, %v94_v54 }
 0x129   :  { %v103_v57 = vadd.f32 1.0, %v178_v55 }
 0x12a   :  { %179 = vpow2.f32 %v157_v56 }
 0x12b   :  { %181 = vrcp.f32 %v103_v57  ;;  %v116_v63 = vand.u32 2147483648, %v103_v57  ;;  %v114_v1 = vand.u32 2147483647, %v103_v57  ;;  %vm110_vm13 = vweird.f32 %v103_v57 }
 0x12d   :  { %v117_v4 = vor.u32 1.1754944e-38, %v116_v63  ;;  %vm115_vm0 = vcmp.eq.f32.partialorder %v114_v1, 8.507059e+37 }
 0x130   :  { %v180_v58 = vpop.eup %179 }
 0x131   :  { %v182_v59 = vpop.eup %181  ;;  %v104_v60 = vadd.f32 1.0, %v180_v58 }
 0x132   :  { %v106_v61 = vmul.f32 %v182_v59, %v103_v57  ;;  %vm111_vm12 = vweird.f32 %v182_v59 }
 0x133   :  { %183 = vrcp.f32 %v104_v60  ;;  %vm112_vm14 = vmor %vm110_vm13, %vm111_vm12  ;;  %v131_v9 = vand.u32 2147483648, %v104_v60  ;;  %v129_v11 = vand.u32 2147483647, %v104_v60  ;;  %vm125_vm2 = vweird.f32 %v104_v60 }
 0x134   :  { %v107_v62 = vsub.f32 1.0, %v106_v61 }
 0x135   :  { %v132_v13 = vor.u32 1.1754944e-38, %v131_v9  ;;  %vm130_vm4 = vcmp.eq.f32.partialorder %v129_v11, 8.507059e+37 }
 0x136   :  { %v108_v0 = vmul.f32 %v182_v59, %v107_v62 }
 0x138   :  { %v109_v2 = vadd.f32 %v182_v59, %v108_v0 }
 0x139   :  { %v184_v3 = vpop.eup %183 }
 0x13a   :  { %v121_v5 = vmul.f32 %v184_v3, %v104_v60  ;;  %v113_v6 = vsel %vm112_vm14, %v182_v59, %v109_v2  ;;  %vm126_vm1 = vweird.f32 %v184_v3 }
 0x13b   :  { %v118_v7 = vsel %vm115_vm0, %v117_v4, %v113_v6  ;;  %vm127_vm3 = vmor %vm125_vm2, %vm126_vm1 }
 0x13c   :  { %v122_v8 = vsub.f32 1.0, %v121_v5  ;;  %136 = vst.msk [vmem:[#allocation2] sm:$0xff] %vm135_vm15, %v118_v7 }
 0x13e   :  { %v123_v10 = vmul.f32 %v184_v3, %v122_v8 }
 0x140   :  { %v124_v12 = vadd.f32 %v184_v3, %v123_v10 }
 0x142   :  { %v128_v14 = vsel %vm127_vm3, %v184_v3, %v124_v12 }
 0x143   :  { %v133_v15 = vsel %vm130_vm4, %v132_v13, %v128_v14 }
 0x144   :  { %137 = vst.msk [vmem:[#allocation2 + $0x8] sm:$0xff] %vm135_vm15, %v133_v15 }
 0x145   :  { %150 = dma.vmem_to_hbm [thread:$0]  %s143_s1, 256, %s145_s15, [#allocation3], %s212_s16, %s212_s16, %s213_s17  }
 0x146   :  { %209 = dma.done.wait [#allocation3], 256  }
 0x147   :  { %210 = vsyncadd [#allocation3], 4294967040 }
 0x148   :  { %155 = vsyncpa [#allocation3], 1 }

</bundles_post_ra>
